<compile_context>
chip_gen: v6e
topology: v6e:2x2x1
jax: 0.10.0
libtpu: 0.0.40
codegen_flags: <defaults>
</compile_context>

<pallas_src>
import jax
import jax.numpy as jnp
from jax.experimental import pallas as pl
from jax.experimental.pallas import tpu as pltpu


def _round_up(x, m):
    return (x + m - 1) // m * m


# ----------------------------------------------------------------------------
# Pallas kernels
# ----------------------------------------------------------------------------
def _conv_pool_kernel(p00_ref, p01_ref, p10_ref, p11_ref, w_ref, b_ref, o_ref):
    """Fused conv + bias + ReLU + 2x2 maxpool.

    p{dy}{dx}: (K_pad, TM) bf16 im2col patches for pooling offset (dy, dx)
    w:         (Cout, K_pad) bf16
    b:         (Cout, 1) f32
    o:         (Cout, TM)  bf16   (pooled, ReLU'd activations, lane-dense)
    """
    w = w_ref[...]
    a00 = jnp.dot(w, p00_ref[...], preferred_element_type=jnp.float32)
    a01 = jnp.dot(w, p01_ref[...], preferred_element_type=jnp.float32)
    a10 = jnp.dot(w, p10_ref[...], preferred_element_type=jnp.float32)
    a11 = jnp.dot(w, p11_ref[...], preferred_element_type=jnp.float32)
    pooled = jnp.maximum(jnp.maximum(a00, a01), jnp.maximum(a10, a11))
    y = jnp.maximum(pooled + b_ref[...], 0.0)            # f32 epilogue
    o_ref[...] = y.astype(o_ref.dtype)


def _fc3_kernel(x_ref, w1_ref, b1_ref, w2_ref, b2_ref, w3_ref, b3_ref, o_ref):
    """Fused fc1+ReLU -> fc2+ReLU -> fc3; all widths padded to 128 lanes."""
    h0 = x_ref[...]                                                   # bf16
    h1 = jnp.dot(h0, w1_ref[...], preferred_element_type=jnp.float32)
    h1 = jnp.maximum(h1 + b1_ref[...], 0.0).astype(jnp.bfloat16)
    h2 = jnp.dot(h1, w2_ref[...], preferred_element_type=jnp.float32)
    h2 = jnp.maximum(h2 + b2_ref[...], 0.0).astype(jnp.bfloat16)
    o = jnp.dot(h2, w3_ref[...], preferred_element_type=jnp.float32)
    o_ref[...] = o + b3_ref[...]                                      # f32 out


# ----------------------------------------------------------------------------
# Conv stage: im2col (grouped by pooling offset) + fused Pallas kernel
# ----------------------------------------------------------------------------
def conv_pool_stage(x_cnhw, w_mat, b_col, k):
    """x_cnhw: (Cin, B, H, W) bf16; w_mat: (Cout, K_pad) bf16; b_col: (Cout, 1) f32.

    Returns pooled/ReLU'd activations, shape (Cout, B, Hp, Wp), bf16.
    """
    Cin, B, H, W = x_cnhw.shape
    Ho, Wo = H - k + 1, W - k + 1
    Hp, Wp = Ho // 2, Wo // 2
    Cout, K_pad = w_mat.shape
    K = Cin * k * k
    M = B * Hp * Wp
    tm = min(512, _round_up(M, 128))     # lane-dense M tile (fits v7x VMEM too)
    M_pad = _round_up(M, tm)

    # im2col grouped by pooling offset (dy, dx): four (K, M) patch matrices.
    # TODO(synk): move this gather fully into the kernel (VMEM-resident input
    # tile) to avoid materializing the patch matrices in HBM.
    def patches(dy, dx):
        cols = []
        for kh in range(k):
            for kw in range(k):
                r0, c0 = dy + kh, dx + kw
                cols.append(
                    x_cnhw[:, :, r0:r0 + 2 * Hp - 1:2, c0:c0 + 2 * Wp - 1:2])
        p = jnp.stack(cols, axis=1)                 # (Cin, k*k, B, Hp, Wp)
        p = p.reshape(K, M)                         # (ci,kh,kw) x (b,ph,pw)
        return jnp.pad(p, ((0, K_pad - K), (0, M_pad - M)))

    p00, p01, p10, p11 = (patches(dy, dx) for dy in (0, 1) for dx in (0, 1))

    patch_spec = pl.BlockSpec((K_pad, tm), lambda i: (0, i))
    out = pl.pallas_call(
        _conv_pool_kernel,
        out_shape=jax.ShapeDtypeStruct((Cout, M_pad), jnp.bfloat16),
        grid=(M_pad // tm,),
        in_specs=[patch_spec, patch_spec, patch_spec, patch_spec,
                  pl.BlockSpec((Cout, K_pad), lambda i: (0, 0)),
                  pl.BlockSpec((Cout, 1), lambda i: (0, 0))],
        out_specs=pl.BlockSpec((Cout, tm), lambda i: (0, i)),
        compiler_params=pltpu.CompilerParams(
            dimension_semantics=("parallel",)),
    )(p00, p01, p10, p11, w_mat, b_col)
    return out[:, :M].reshape(Cout, B, Hp, Wp)


# ----------------------------------------------------------------------------
# Fused FC head
# ----------------------------------------------------------------------------
_FC_IN, _FC_H1, _FC_H2, _FC_OUT = 800, 120, 84, 10
_FC_IN_P, _FC_W = 896, 128          # padded widths (multiples of 128)


def fc_head(flat_bf16, prep):
    """flat: (B, 800) bf16 -> logits (B, 10) f32, one fused Pallas kernel."""
    B = flat_bf16.shape[0]
    tm = min(256, _round_up(B, 16))
    Mp = _round_up(B, tm)
    x = jnp.pad(flat_bf16, ((0, Mp - B), (0, _FC_IN_P - _FC_IN)))

    def full(shape):
        return pl.BlockSpec(shape, lambda i: (0, 0))

    out = pl.pallas_call(
        _fc3_kernel,
        out_shape=jax.ShapeDtypeStruct((Mp, _FC_W), jnp.float32),
        grid=(Mp // tm,),
        in_specs=[pl.BlockSpec((tm, _FC_IN_P), lambda i: (i, 0)),
                  full((_FC_IN_P, _FC_W)), full((1, _FC_W)),
                  full((_FC_W, _FC_W)), full((1, _FC_W)),
                  full((_FC_W, _FC_W)), full((1, _FC_W))],
        out_specs=pl.BlockSpec((tm, _FC_W), lambda i: (i, 0)),
        compiler_params=pltpu.CompilerParams(
            dimension_semantics=("parallel",)),
    )(x, prep["fc1_w"], prep["fc1_b"], prep["fc2_w"], prep["fc2_b"],
      prep["fc3_w"], prep["fc3_b"])
    return out[:B, :_FC_OUT]


# ----------------------------------------------------------------------------
# Parameters (PyTorch-like init) + one-time kernel-layout preparation
# ----------------------------------------------------------------------------
def _uniform(key, shape, bound):
    return jax.random.uniform(key, shape, jnp.float32, -bound, bound)


def init_params(key):
    ks = jax.random.split(key, 10)
    p = {}
    fan = 3 * 5 * 5
    p["conv1_w"] = _uniform(ks[0], (16, 3, 5, 5), fan ** -0.5)
    p["conv1_b"] = _uniform(ks[1], (16,), fan ** -0.5)
    fan = 16 * 5 * 5
    p["conv2_w"] = _uniform(ks[2], (32, 16, 5, 5), fan ** -0.5)
    p["conv2_b"] = _uniform(ks[3], (32,), fan ** -0.5)
    fan = 32 * 5 * 5
    p["fc1_w"] = _uniform(ks[4], (120, fan), fan ** -0.5)   # torch (out, in)
    p["fc1_b"] = _uniform(ks[5], (120,), fan ** -0.5)
    p["fc2_w"] = _uniform(ks[6], (84, 120), 120 ** -0.5)
    p["fc2_b"] = _uniform(ks[7], (84,), 120 ** -0.5)
    p["fc3_w"] = _uniform(ks[8], (10, 84), 84 ** -0.5)
    p["fc3_b"] = _uniform(ks[9], (10,), 84 ** -0.5)
    return p


def _pad2(a, rows, cols):
    return jnp.pad(a, ((0, rows - a.shape[0]), (0, cols - a.shape[1])))


def prepare_params(params):
    """One-time conversion to kernel layout: bf16 matmul operands padded to
    MXU/lane-friendly shapes; biases stay f32 (f32 epilogue math)."""
    prep = {}
    prep["conv1_w"] = _pad2(params["conv1_w"].reshape(16, 75), 16, 128
                            ).astype(jnp.bfloat16)
    prep["conv1_b"] = params["conv1_b"].reshape(16, 1)
    prep["conv2_w"] = _pad2(params["conv2_w"].reshape(32, 400), 32, 512
                            ).astype(jnp.bfloat16)
    prep["conv2_b"] = params["conv2_b"].reshape(32, 1)
    prep["fc1_w"] = _pad2(params["fc1_w"].T, _FC_IN_P, _FC_W).astype(jnp.bfloat16)
    prep["fc1_b"] = _pad2(params["fc1_b"].reshape(1, -1), 1, _FC_W)
    prep["fc2_w"] = _pad2(params["fc2_w"].T, _FC_W, _FC_W).astype(jnp.bfloat16)
    prep["fc2_b"] = _pad2(params["fc2_b"].reshape(1, -1), 1, _FC_W)
    prep["fc3_w"] = _pad2(params["fc3_w"].T, _FC_W, _FC_W).astype(jnp.bfloat16)
    prep["fc3_b"] = _pad2(params["fc3_b"].reshape(1, -1), 1, _FC_W)
    return prep


# ----------------------------------------------------------------------------
# Forward pass (matches LeNet.forward semantics)
# ----------------------------------------------------------------------------
@jax.jit
def lenet_forward(prep, x):
    """x: (B, 3, 32, 32) f32 -> logits (B, 10) f32."""
    B = x.shape[0]
    # channel-major CNHW activation layout keeps matmul outputs lane-dense and
    # avoids any NCHW<->matmul transpose between stages.
    a0 = x.transpose(1, 0, 2, 3).astype(jnp.bfloat16)                # (3,B,32,32)
    a1 = conv_pool_stage(a0, prep["conv1_w"], prep["conv1_b"], k=5)  # (16,B,14,14)
    a2 = conv_pool_stage(a1, prep["conv2_w"], prep["conv2_b"], k=5)  # (32,B,5,5)
    flat = a2.transpose(1, 0, 2, 3).reshape(B, 32 * 5 * 5)           # torch view order
    return fc_head(flat, prep)                                       # (B, 10) f32


if __name__ == "__main__":
    key = jax.random.PRNGKey(0)
    pkey, xkey = jax.random.split(key)
    params = init_params(pkey)
    prep = prepare_params(params)            # one-time layout / dtype prep
    # The flatten to 32*5*5 forces 32x32 spatial input; small batch of 2.
    x = jax.random.normal(xkey, (2, 3, 32, 32), jnp.float32)

    out = lenet_forward(prep, x)
    jax.block_until_ready(out)
    assert out.shape == (2, 10), out.shape
    print("KERNEL_OK")
</pallas_src>

<mosaic_0001>
module attributes {stable_mosaic.version = 11 : i64} {
  func.func @_conv_pool_kernel(%arg0: i32, %arg1: memref<128x512xbf16, #tpu.memory_space<vmem>>, %arg2: memref<128x512xbf16, #tpu.memory_space<vmem>>, %arg3: memref<128x512xbf16, #tpu.memory_space<vmem>>, %arg4: memref<128x512xbf16, #tpu.memory_space<vmem>>, %arg5: memref<16x128xbf16, #tpu.memory_space<vmem>>, %arg6: memref<16x1xf32, #tpu.memory_space<vmem>>, %arg7: memref<16x512xbf16, #tpu.memory_space<vmem>>) attributes {dimension_semantics = [#tpu.dimension_semantics<parallel>], iteration_bounds = array<i64: 1>, scalar_prefetch = 0 : i64, scratch_operands = 0 : i64, tpu.core_type = #tpu.core_type<tc>, window_params = [{transform_indices = @transform_0, window_bounds = array<i64: 128, 512>}, {transform_indices = @transform_1, window_bounds = array<i64: 128, 512>}, {transform_indices = @transform_2, window_bounds = array<i64: 128, 512>}, {transform_indices = @transform_3, window_bounds = array<i64: 128, 512>}, {pipeline_mode = #tpu.pipeline_mode<synchronous>, transform_indices = @transform_4, window_bounds = array<i64: 16, 128>}, {pipeline_mode = #tpu.pipeline_mode<synchronous>, transform_indices = @transform_5, window_bounds = array<i64: 16, 1>}, {transform_indices = @transform_6, window_bounds = array<i64: 16, 512>}]} {
    %c0 = arith.constant 0 : index
    %c0_0 = arith.constant 0 : index
    %0 = vector.load %arg5[%c0, %c0_0] : memref<16x128xbf16, #tpu.memory_space<vmem>>, vector<16x128xbf16>
    %c0_1 = arith.constant 0 : index
    %c0_2 = arith.constant 0 : index
    %1 = vector.load %arg1[%c0_1, %c0_2] : memref<128x512xbf16, #tpu.memory_space<vmem>>, vector<128x512xbf16>
    %cst = arith.constant dense<0.000000e+00> : vector<16x512xf32>
    %2 = tpu.matmul %0, %1, %cst {dimension_numbers = #tpu.dot_dimension_numbers<[1], [0], [0], [1], [0, 0, 1, 1], [], []>} : vector<16x128xbf16>, vector<128x512xbf16>, vector<16x512xf32> -> vector<16x512xf32>
    %c0_3 = arith.constant 0 : index
    %c0_4 = arith.constant 0 : index
    %3 = vector.load %arg2[%c0_3, %c0_4] : memref<128x512xbf16, #tpu.memory_space<vmem>>, vector<128x512xbf16>
    %cst_5 = arith.constant dense<0.000000e+00> : vector<16x512xf32>
    %4 = tpu.matmul %0, %3, %cst_5 {dimension_numbers = #tpu.dot_dimension_numbers<[1], [0], [0], [1], [0, 0, 1, 1], [], []>} : vector<16x128xbf16>, vector<128x512xbf16>, vector<16x512xf32> -> vector<16x512xf32>
    %c0_6 = arith.constant 0 : index
    %c0_7 = arith.constant 0 : index
    %5 = vector.load %arg3[%c0_6, %c0_7] : memref<128x512xbf16, #tpu.memory_space<vmem>>, vector<128x512xbf16>
    %cst_8 = arith.constant dense<0.000000e+00> : vector<16x512xf32>
    %6 = tpu.matmul %0, %5, %cst_8 {dimension_numbers = #tpu.dot_dimension_numbers<[1], [0], [0], [1], [0, 0, 1, 1], [], []>} : vector<16x128xbf16>, vector<128x512xbf16>, vector<16x512xf32> -> vector<16x512xf32>
    %c0_9 = arith.constant 0 : index
    %c0_10 = arith.constant 0 : index
    %7 = vector.load %arg4[%c0_9, %c0_10] : memref<128x512xbf16, #tpu.memory_space<vmem>>, vector<128x512xbf16>
    %cst_11 = arith.constant dense<0.000000e+00> : vector<16x512xf32>
    %8 = tpu.matmul %0, %7, %cst_11 {dimension_numbers = #tpu.dot_dimension_numbers<[1], [0], [0], [1], [0, 0, 1, 1], [], []>} : vector<16x128xbf16>, vector<128x512xbf16>, vector<16x512xf32> -> vector<16x512xf32>
    %9 = arith.maximumf %2, %4 : vector<16x512xf32>
    %10 = arith.maximumf %6, %8 : vector<16x512xf32>
    %11 = arith.maximumf %9, %10 : vector<16x512xf32>
    %c0_12 = arith.constant 0 : index
    %c0_13 = arith.constant 0 : index
    %12 = vector.load %arg6[%c0_12, %c0_13] : memref<16x1xf32, #tpu.memory_space<vmem>>, vector<16x1xf32>
    %13 = vector.broadcast %12 : vector<16x1xf32> to vector<16x512xf32>
    %14 = arith.addf %11, %13 : vector<16x512xf32>
    %cst_14 = arith.constant 0.000000e+00 : f32
    %15 = vector.broadcast %cst_14 : f32 to vector<16x512xf32>
    %16 = arith.maximumf %14, %15 : vector<16x512xf32>
    %17 = arith.truncf %16 : vector<16x512xf32> to vector<16x512xbf16>
    %c0_15 = arith.constant 0 : index
    %c0_16 = arith.constant 0 : index
    %18 = vector.load %arg7[%c0_15, %c0_16] : memref<16x512xbf16, #tpu.memory_space<vmem>>, vector<16x512xbf16>
    tpu.vector_store %arg7[%c0_15, %c0_16], %17 {strides = array<i32>} : memref<16x512xbf16, #tpu.memory_space<vmem>>, vector<16x512xbf16>,
    return
  }
  func.func @transform_0(%arg0: i32) -> (i32, i32) {
    %c0_i32 = arith.constant 0 : i32
    %c0_i32_0 = arith.constant 0 : i32
    return %c0_i32, %arg0 : i32, i32
  }
  func.func @transform_1(%arg0: i32) -> (i32, i32) {
    %c0_i32 = arith.constant 0 : i32
    %c0_i32_0 = arith.constant 0 : i32
    return %c0_i32, %arg0 : i32, i32
  }
  func.func @transform_2(%arg0: i32) -> (i32, i32) {
    %c0_i32 = arith.constant 0 : i32
    %c0_i32_0 = arith.constant 0 : i32
    return %c0_i32, %arg0 : i32, i32
  }
  func.func @transform_3(%arg0: i32) -> (i32, i32) {
    %c0_i32 = arith.constant 0 : i32
    %c0_i32_0 = arith.constant 0 : i32
    return %c0_i32, %arg0 : i32, i32
  }
  func.func @transform_4(%arg0: i32) -> (i32, i32) {
    %c0_i32 = arith.constant 0 : i32
    %c0_i32_0 = arith.constant 0 : i32
    %c0_i32_1 = arith.constant 0 : i32
    return %c0_i32, %c0_i32_0 : i32, i32
  }
  func.func @transform_5(%arg0: i32) -> (i32, i32) {
    %c0_i32 = arith.constant 0 : i32
    %c0_i32_0 = arith.constant 0 : i32
    %c0_i32_1 = arith.constant 0 : i32
    return %c0_i32, %c0_i32_0 : i32, i32
  }
  func.func @transform_6(%arg0: i32) -> (i32, i32) {
    %c0_i32 = arith.constant 0 : i32
    %c0_i32_0 = arith.constant 0 : i32
    return %c0_i32, %arg0 : i32, i32
  }
}

module attributes {stable_mosaic.version = 11 : i64} {
  func.func @_conv_pool_kernel(%arg0: i32, %arg1: memref<512x128xbf16, #tpu.memory_space<vmem>>, %arg2: memref<512x128xbf16, #tpu.memory_space<vmem>>, %arg3: memref<512x128xbf16, #tpu.memory_space<vmem>>, %arg4: memref<512x128xbf16, #tpu.memory_space<vmem>>, %arg5: memref<32x512xbf16, #tpu.memory_space<vmem>>, %arg6: memref<32x1xf32, #tpu.memory_space<vmem>>, %arg7: memref<32x128xbf16, #tpu.memory_space<vmem>>) attributes {dimension_semantics = [#tpu.dimension_semantics<parallel>], iteration_bounds = array<i64: 1>, scalar_prefetch = 0 : i64, scratch_operands = 0 : i64, tpu.core_type = #tpu.core_type<tc>, window_params = [{transform_indices = @transform_0, window_bounds = array<i64: 512, 128>}, {transform_indices = @transform_1, window_bounds = array<i64: 512, 128>}, {transform_indices = @transform_2, window_bounds = array<i64: 512, 128>}, {transform_indices = @transform_3, window_bounds = array<i64: 512, 128>}, {pipeline_mode = #tpu.pipeline_mode<synchronous>, transform_indices = @transform_4, window_bounds = array<i64: 32, 512>}, {pipeline_mode = #tpu.pipeline_mode<synchronous>, transform_indices = @transform_5, window_bounds = array<i64: 32, 1>}, {transform_indices = @transform_6, window_bounds = array<i64: 32, 128>}]} {
    %c0 = arith.constant 0 : index
    %c0_0 = arith.constant 0 : index
    %0 = vector.load %arg5[%c0, %c0_0] : memref<32x512xbf16, #tpu.memory_space<vmem>>, vector<32x512xbf16>
    %c0_1 = arith.constant 0 : index
    %c0_2 = arith.constant 0 : index
    %1 = vector.load %arg1[%c0_1, %c0_2] : memref<512x128xbf16, #tpu.memory_space<vmem>>, vector<512x128xbf16>
    %cst = arith.constant dense<0.000000e+00> : vector<32x128xf32>
    %2 = tpu.matmul %0, %1, %cst {dimension_numbers = #tpu.dot_dimension_numbers<[1], [0], [0], [1], [0, 0, 1, 1], [], []>} : vector<32x512xbf16>, vector<512x128xbf16>, vector<32x128xf32> -> vector<32x128xf32>
    %c0_3 = arith.constant 0 : index
    %c0_4 = arith.constant 0 : index
    %3 = vector.load %arg2[%c0_3, %c0_4] : memref<512x128xbf16, #tpu.memory_space<vmem>>, vector<512x128xbf16>
    %cst_5 = arith.constant dense<0.000000e+00> : vector<32x128xf32>
    %4 = tpu.matmul %0, %3, %cst_5 {dimension_numbers = #tpu.dot_dimension_numbers<[1], [0], [0], [1], [0, 0, 1, 1], [], []>} : vector<32x512xbf16>, vector<512x128xbf16>, vector<32x128xf32> -> vector<32x128xf32>
    %c0_6 = arith.constant 0 : index
    %c0_7 = arith.constant 0 : index
    %5 = vector.load %arg3[%c0_6, %c0_7] : memref<512x128xbf16, #tpu.memory_space<vmem>>, vector<512x128xbf16>
    %cst_8 = arith.constant dense<0.000000e+00> : vector<32x128xf32>
    %6 = tpu.matmul %0, %5, %cst_8 {dimension_numbers = #tpu.dot_dimension_numbers<[1], [0], [0], [1], [0, 0, 1, 1], [], []>} : vector<32x512xbf16>, vector<512x128xbf16>, vector<32x128xf32> -> vector<32x128xf32>
    %c0_9 = arith.constant 0 : index
    %c0_10 = arith.constant 0 : index
    %7 = vector.load %arg4[%c0_9, %c0_10] : memref<512x128xbf16, #tpu.memory_space<vmem>>, vector<512x128xbf16>
    %cst_11 = arith.constant dense<0.000000e+00> : vector<32x128xf32>
    %8 = tpu.matmul %0, %7, %cst_11 {dimension_numbers = #tpu.dot_dimension_numbers<[1], [0], [0], [1], [0, 0, 1, 1], [], []>} : vector<32x512xbf16>, vector<512x128xbf16>, vector<32x128xf32> -> vector<32x128xf32>
    %9 = arith.maximumf %2, %4 : vector<32x128xf32>
    %10 = arith.maximumf %6, %8 : vector<32x128xf32>
    %11 = arith.maximumf %9, %10 : vector<32x128xf32>
    %c0_12 = arith.constant 0 : index
    %c0_13 = arith.constant 0 : index
    %12 = vector.load %arg6[%c0_12, %c0_13] : memref<32x1xf32, #tpu.memory_space<vmem>>, vector<32x1xf32>
    %13 = vector.broadcast %12 : vector<32x1xf32> to vector<32x128xf32>
    %14 = arith.addf %11, %13 : vector<32x128xf32>
    %cst_14 = arith.constant 0.000000e+00 : f32
    %15 = vector.broadcast %cst_14 : f32 to vector<32x128xf32>
    %16 = arith.maximumf %14, %15 : vector<32x128xf32>
    %17 = arith.truncf %16 : vector<32x128xf32> to vector<32x128xbf16>
    %c0_15 = arith.constant 0 : index
    %c0_16 = arith.constant 0 : index
    %18 = vector.load %arg7[%c0_15, %c0_16] : memref<32x128xbf16, #tpu.memory_space<vmem>>, vector<32x128xbf16>
    tpu.vector_store %arg7[%c0_15, %c0_16], %17 {strides = array<i32>} : memref<32x128xbf16, #tpu.memory_space<vmem>>, vector<32x128xbf16>,
    return
  }
  func.func @transform_0(%arg0: i32) -> (i32, i32) {
    %c0_i32 = arith.constant 0 : i32
    %c0_i32_0 = arith.constant 0 : i32
    return %c0_i32, %arg0 : i32, i32
  }
  func.func @transform_1(%arg0: i32) -> (i32, i32) {
    %c0_i32 = arith.constant 0 : i32
    %c0_i32_0 = arith.constant 0 : i32
    return %c0_i32, %arg0 : i32, i32
  }
  func.func @transform_2(%arg0: i32) -> (i32, i32) {
    %c0_i32 = arith.constant 0 : i32
    %c0_i32_0 = arith.constant 0 : i32
    return %c0_i32, %arg0 : i32, i32
  }
  func.func @transform_3(%arg0: i32) -> (i32, i32) {
    %c0_i32 = arith.constant 0 : i32
    %c0_i32_0 = arith.constant 0 : i32
    return %c0_i32, %arg0 : i32, i32
  }
  func.func @transform_4(%arg0: i32) -> (i32, i32) {
    %c0_i32 = arith.constant 0 : i32
    %c0_i32_0 = arith.constant 0 : i32
    %c0_i32_1 = arith.constant 0 : i32
    return %c0_i32, %c0_i32_0 : i32, i32
  }
  func.func @transform_5(%arg0: i32) -> (i32, i32) {
    %c0_i32 = arith.constant 0 : i32
    %c0_i32_0 = arith.constant 0 : i32
    %c0_i32_1 = arith.constant 0 : i32
    return %c0_i32, %c0_i32_0 : i32, i32
  }
  func.func @transform_6(%arg0: i32) -> (i32, i32) {
    %c0_i32 = arith.constant 0 : i32
    %c0_i32_0 = arith.constant 0 : i32
    return %c0_i32, %arg0 : i32, i32
  }
}

module attributes {stable_mosaic.version = 11 : i64} {
  func.func @_fc3_kernel(%arg0: i32, %arg1: memref<16x896xbf16, #tpu.memory_space<vmem>>, %arg2: memref<896x128xbf16, #tpu.memory_space<vmem>>, %arg3: memref<1x128xf32, #tpu.memory_space<vmem>>, %arg4: memref<128x128xbf16, #tpu.memory_space<vmem>>, %arg5: memref<1x128xf32, #tpu.memory_space<vmem>>, %arg6: memref<128x128xbf16, #tpu.memory_space<vmem>>, %arg7: memref<1x128xf32, #tpu.memory_space<vmem>>, %arg8: memref<16x128xf32, #tpu.memory_space<vmem>>) attributes {dimension_semantics = [#tpu.dimension_semantics<parallel>], iteration_bounds = array<i64: 1>, scalar_prefetch = 0 : i64, scratch_operands = 0 : i64, tpu.core_type = #tpu.core_type<tc>, window_params = [{transform_indices = @transform_0, window_bounds = array<i64: 16, 896>}, {pipeline_mode = #tpu.pipeline_mode<synchronous>, transform_indices = @transform_1, window_bounds = array<i64: 896, 128>}, {pipeline_mode = #tpu.pipeline_mode<synchronous>, transform_indices = @transform_2, window_bounds = array<i64: 1, 128>}, {pipeline_mode = #tpu.pipeline_mode<synchronous>, transform_indices = @transform_3, window_bounds = array<i64: 128, 128>}, {pipeline_mode = #tpu.pipeline_mode<synchronous>, transform_indices = @transform_4, window_bounds = array<i64: 1, 128>}, {pipeline_mode = #tpu.pipeline_mode<synchronous>, transform_indices = @transform_5, window_bounds = array<i64: 128, 128>}, {pipeline_mode = #tpu.pipeline_mode<synchronous>, transform_indices = @transform_6, window_bounds = array<i64: 1, 128>}, {transform_indices = @transform_7, window_bounds = array<i64: 16, 128>}]} {
    %c0 = arith.constant 0 : index
    %c0_0 = arith.constant 0 : index
    %0 = vector.load %arg1[%c0, %c0_0] : memref<16x896xbf16, #tpu.memory_space<vmem>>, vector<16x896xbf16>
    %c0_1 = arith.constant 0 : index
    %c0_2 = arith.constant 0 : index
    %1 = vector.load %arg2[%c0_1, %c0_2] : memref<896x128xbf16, #tpu.memory_space<vmem>>, vector<896x128xbf16>
    %cst = arith.constant dense<0.000000e+00> : vector<16x128xf32>
    %2 = tpu.matmul %0, %1, %cst {dimension_numbers = #tpu.dot_dimension_numbers<[1], [0], [0], [1], [0, 0, 1, 1], [], []>} : vector<16x896xbf16>, vector<896x128xbf16>, vector<16x128xf32> -> vector<16x128xf32>
    %c0_3 = arith.constant 0 : index
    %c0_4 = arith.constant 0 : index
    %3 = vector.load %arg3[%c0_3, %c0_4] : memref<1x128xf32, #tpu.memory_space<vmem>>, vector<1x128xf32>
    %4 = vector.broadcast %3 : vector<1x128xf32> to vector<16x128xf32>
    %5 = arith.addf %2, %4 : vector<16x128xf32>
    %cst_5 = arith.constant 0.000000e+00 : f32
    %6 = vector.broadcast %cst_5 : f32 to vector<16x128xf32>
    %7 = arith.maximumf %5, %6 : vector<16x128xf32>
    %8 = arith.truncf %7 : vector<16x128xf32> to vector<16x128xbf16>
    %c0_6 = arith.constant 0 : index
    %c0_7 = arith.constant 0 : index
    %9 = vector.load %arg4[%c0_6, %c0_7] : memref<128x128xbf16, #tpu.memory_space<vmem>>, vector<128x128xbf16>
    %cst_8 = arith.constant dense<0.000000e+00> : vector<16x128xf32>
    %10 = tpu.matmul %8, %9, %cst_8 {dimension_numbers = #tpu.dot_dimension_numbers<[1], [0], [0], [1], [0, 0, 1, 1], [], []>} : vector<16x128xbf16>, vector<128x128xbf16>, vector<16x128xf32> -> vector<16x128xf32>
    %c0_9 = arith.constant 0 : index
    %c0_10 = arith.constant 0 : index
    %11 = vector.load %arg5[%c0_9, %c0_10] : memref<1x128xf32, #tpu.memory_space<vmem>>, vector<1x128xf32>
    %12 = vector.broadcast %11 : vector<1x128xf32> to vector<16x128xf32>
    %13 = arith.addf %10, %12 : vector<16x128xf32>
    %cst_11 = arith.constant 0.000000e+00 : f32
    %14 = vector.broadcast %cst_11 : f32 to vector<16x128xf32>
    %15 = arith.maximumf %13, %14 : vector<16x128xf32>
    %16 = arith.truncf %15 : vector<16x128xf32> to vector<16x128xbf16>
    %c0_12 = arith.constant 0 : index
    %c0_13 = arith.constant 0 : index
    %17 = vector.load %arg6[%c0_12, %c0_13] : memref<128x128xbf16, #tpu.memory_space<vmem>>, vector<128x128xbf16>
    %cst_14 = arith.constant dense<0.000000e+00> : vector<16x128xf32>
    %18 = tpu.matmul %16, %17, %cst_14 {dimension_numbers = #tpu.dot_dimension_numbers<[1], [0], [0], [1], [0, 0, 1, 1], [], []>} : vector<16x128xbf16>, vector<128x128xbf16>, vector<16x128xf32> -> vector<16x128xf32>
    %c0_15 = arith.constant 0 : index
    %c0_16 = arith.constant 0 : index
    %19 = vector.load %arg7[%c0_15, %c0_16] : memref<1x128xf32, #tpu.memory_space<vmem>>, vector<1x128xf32>
    %20 = vector.broadcast %19 : vector<1x128xf32> to vector<16x128xf32>
    %21 = arith.addf %18, %20 : vector<16x128xf32>
    %c0_17 = arith.constant 0 : index
    %c0_18 = arith.constant 0 : index
    %22 = vector.load %arg8[%c0_17, %c0_18] : memref<16x128xf32, #tpu.memory_space<vmem>>, vector<16x128xf32>
    tpu.vector_store %arg8[%c0_17, %c0_18], %21 {strides = array<i32>} : memref<16x128xf32, #tpu.memory_space<vmem>>, vector<16x128xf32>,
    return
  }
  func.func @transform_0(%arg0: i32) -> (i32, i32) {
    %c0_i32 = arith.constant 0 : i32
    %c0_i32_0 = arith.constant 0 : i32
    return %arg0, %c0_i32 : i32, i32
  }
  func.func @transform_1(%arg0: i32) -> (i32, i32) {
    %c0_i32 = arith.constant 0 : i32
    %c0_i32_0 = arith.constant 0 : i32
    %c0_i32_1 = arith.constant 0 : i32
    return %c0_i32, %c0_i32_0 : i32, i32
  }
  func.func @transform_2(%arg0: i32) -> (i32, i32) {
    %c0_i32 = arith.constant 0 : i32
    %c0_i32_0 = arith.constant 0 : i32
    %c0_i32_1 = arith.constant 0 : i32
    return %c0_i32, %c0_i32_0 : i32, i32
  }
  func.func @transform_3(%arg0: i32) -> (i32, i32) {
    %c0_i32 = arith.constant 0 : i32
    %c0_i32_0 = arith.constant 0 : i32
    %c0_i32_1 = arith.constant 0 : i32
    return %c0_i32, %c0_i32_0 : i32, i32
  }
  func.func @transform_4(%arg0: i32) -> (i32, i32) {
    %c0_i32 = arith.constant 0 : i32
    %c0_i32_0 = arith.constant 0 : i32
    %c0_i32_1 = arith.constant 0 : i32
    return %c0_i32, %c0_i32_0 : i32, i32
  }
  func.func @transform_5(%arg0: i32) -> (i32, i32) {
    %c0_i32 = arith.constant 0 : i32
    %c0_i32_0 = arith.constant 0 : i32
    %c0_i32_1 = arith.constant 0 : i32
    return %c0_i32, %c0_i32_0 : i32, i32
  }
  func.func @transform_6(%arg0: i32) -> (i32, i32) {
    %c0_i32 = arith.constant 0 : i32
    %c0_i32_0 = arith.constant 0 : i32
    %c0_i32_1 = arith.constant 0 : i32
    return %c0_i32, %c0_i32_0 : i32, i32
  }
  func.func @transform_7(%arg0: i32) -> (i32, i32) {
    %c0_i32 = arith.constant 0 : i32
    %c0_i32_0 = arith.constant 0 : i32
    return %arg0, %c0_i32 : i32, i32
  }
}

</mosaic_0001>

<bundles_post_ra>
// kernel: lenet_forward.3
= control target key start
LH: loop header
LB: loop body
LE: loop exit
PB: predicated region body
PF: predicated region fallthrough
CT: control target
= control target key end

     0   :  { %v1560_v1 = vmov 0   ;;  %s2020_s0 = inlined_call_operand.vmem [shape: bf16[128,512], index: 0, kind: input, shape index: {}]   ;;  %s2021_s4 = inlined_call_operand.vmem [shape: bf16[16,128], index: 4, kind: input, shape index: {}]   ;;  %s2022_s1 = inlined_call_operand.vmem [shape: bf16[128,512], index: 1, kind: input, shape index: {}]   ;;  %s2023_s2 = inlined_call_operand.vmem [shape: bf16[128,512], index: 2, kind: input, shape index: {}]   ;;  %s2024_s3 = inlined_call_operand.vmem [shape: bf16[128,512], index: 3, kind: input, shape index: {}]   ;;  %s2025_s5 = inlined_call_operand.vmem [shape: f32[16,1], index: 5, kind: input, shape index: {}]   ;;  %s2026_s6 = inlined_call_operand.vmem [shape: bf16[16,512], index: 6, kind: output, shape index: {}]  }
   0x1   :  { %v1367_v0 = vld [vmem:[%s2020_s0 + $0xe4] ss:$16 sps:$4 sm:$0xff]   ;;  %256 = vmatprep.mubr.bf16.mxu0 %v1560_v1  ;;  %299 = vmatprep.mubr.bf16.mxu1 %v1560_v1  ;;  %v1369_v2 = vld [vmem:[%s2020_s0 + $0xec] ss:$16 sps:$4 sm:$0xff]   ;;  %v1371_v3 = vld [vmem:[%s2020_s0 + $0xe0] ss:$16 sps:$4 sm:$0xff]  }
   0x2   :  { %1366 = vset.pattern.permute.xlu0 %v1560_v1  ;;  %224 = vmatprep.subr.bf16.mxu0 %v1367_v0  ;;  %v1372_v4 = vld [vmem:[%s2020_s0 + $0xe8] ss:$16 sps:$4 sm:$0xff]   ;;  %v1373_v5 = vld [vmem:[%s2020_s0 + $0xc4] ss:$16 sps:$4 sm:$0xff]   ;;  %v1375_v6 = vld [vmem:[%s2020_s0 + $0xcc] ss:$16 sps:$4 sm:$0xff]  }
   0x3   :  { %267 = vmatprep.subr.bf16.mxu1 %v1369_v2  ;;  %225 = vmatpush1.bf16.msra.mxu0 %v1371_v3  ;;  %v1377_v7 = vld [vmem:[%s2020_s0 + $0xc0] ss:$16 sps:$4 sm:$0xff]   ;;  %v1378_v8 = vld [vmem:[%s2020_s0 + $0xc8] ss:$16 sps:$4 sm:$0xff]   ;;  %v1379_v9 = vld [vmem:[%s2020_s0 + $0xa4] ss:$16 sps:$4 sm:$0xff]  }
   0x4   :  { %268 = vmatpush1.bf16.msra.mxu1 %v1372_v4  ;;  %226 = vmatprep.subr.bf16.mxu0 %v1373_v5  ;;  %v1381_v10 = vld [vmem:[%s2020_s0 + $0xac] ss:$16 sps:$4 sm:$0xff]   ;;  %v1383_v11 = vld [vmem:[%s2020_s0 + $0xa0] ss:$16 sps:$4 sm:$0xff]   ;;  %v1384_v12 = vld [vmem:[%s2020_s0 + $0xa8] ss:$16 sps:$4 sm:$0xff]  }
   0x5   :  { %269 = vmatprep.subr.bf16.mxu1 %v1375_v6  ;;  %v1385_v13 = vld [vmem:[%s2020_s0 + $0x84] ss:$16 sps:$4 sm:$0xff]   ;;  %v1387_v14 = vld [vmem:[%s2020_s0 + $0x8c] ss:$16 sps:$4 sm:$0xff]   ;;  %v1389_v15 = vld [vmem:[%s2020_s0 + $0x80] ss:$16 sps:$4 sm:$0xff]  }
   0x6   :  { %v1390_v16 = vld [vmem:[%s2020_s0 + $0x88] ss:$16 sps:$4 sm:$0xff]   ;;  %v1391_v17 = vld [vmem:[%s2020_s0 + $0x64] ss:$16 sps:$4 sm:$0xff]   ;;  %v1393_v18 = vld [vmem:[%s2020_s0 + $0x6c] ss:$16 sps:$4 sm:$0xff]  }
   0x7   :  { %227 = vmatpush1.bf16.msra.mxu0 %v1377_v7  ;;  %v1395_v19 = vld [vmem:[%s2020_s0 + $0x60] ss:$16 sps:$4 sm:$0xff]   ;;  %v1396_v20 = vld [vmem:[%s2020_s0 + $0x68] ss:$16 sps:$4 sm:$0xff]   ;;  %v1397_v21 = vld [vmem:[%s2020_s0 + $0x44] ss:$16 sps:$4 sm:$0xff]  }
   0x8   :  { %270 = vmatpush1.bf16.msra.mxu1 %v1378_v8  ;;  %228 = vmatprep.subr.bf16.mxu0 %v1379_v9  ;;  %v1399_v22 = vld [vmem:[%s2020_s0 + $0x4c] ss:$16 sps:$4 sm:$0xff]   ;;  %v1401_v23 = vld [vmem:[%s2020_s0 + $0x40] ss:$16 sps:$4 sm:$0xff]   ;;  %v1402_v24 = vld [vmem:[%s2020_s0 + $0x48] ss:$16 sps:$4 sm:$0xff]  }
   0x9   :  { %271 = vmatprep.subr.bf16.mxu1 %v1381_v10  ;;  %v1403_v25 = vld [vmem:[%s2020_s0 + $0x24] ss:$16 sps:$4 sm:$0xff]   ;;  %v1405_v26 = vld [vmem:[%s2020_s0 + $0x2c] ss:$16 sps:$4 sm:$0xff]   ;;  %v1407_v27 = vld [vmem:[%s2020_s0 + $0x20] ss:$16 sps:$4 sm:$0xff]  }
   0xa   :  { %v1408_v28 = vld [vmem:[%s2020_s0 + $0x28] ss:$16 sps:$4 sm:$0xff]   ;;  %v1409_v29 = vld [vmem:[%s2020_s0 + $0x4] ss:$16 sps:$4 sm:$0xff]   ;;  %v1411_v30 = vld [vmem:[%s2020_s0 + $0xc] ss:$16 sps:$4 sm:$0xff]  }
   0xb   :  { %229 = vmatpush1.bf16.msra.mxu0 %v1383_v11  ;;  %v1413_v31 = vld [vmem:[%s2020_s0] ss:$16 sps:$4 sm:$0xff]   ;;  %v1414_v32 = vld [vmem:[%s2020_s0 + $0x8] ss:$16 sps:$4 sm:$0xff]   ;;  %v1418_v33 = vld [vmem:[%s2022_s1 + $0xe4] ss:$16 sps:$4 sm:$0xff]  }
   0xc   :  { %272 = vmatpush1.bf16.msra.mxu1 %v1384_v12  ;;  %230 = vmatprep.subr.bf16.mxu0 %v1385_v13  ;;  %v1421_v34 = vld [vmem:[%s2022_s1 + $0xec] ss:$16 sps:$4 sm:$0xff]   ;;  %v1704_v35 = vld [vmem:[%s2021_s4] sm:$0xff]   ;;  %v1419_v37 = vld [vmem:[%s2022_s1 + $0xe8] ss:$16 sps:$4 sm:$0xff]  }
   0xd   :  { %273 = vmatprep.subr.bf16.mxu1 %v1387_v14  ;;  %v1416_v36 = vld [vmem:[%s2022_s1 + $0xe0] ss:$16 sps:$4 sm:$0xff]   ;;  %v1424_v38 = vld [vmem:[%s2022_s1 + $0xc4] ss:$16 sps:$4 sm:$0xff]   ;;  %v1427_v39 = vld [vmem:[%s2022_s1 + $0xcc] ss:$16 sps:$4 sm:$0xff]  }
   0xe   :  { %v1422_v40 = vld [vmem:[%s2022_s1 + $0xc0] ss:$16 sps:$4 sm:$0xff]   ;;  %v1425_v41 = vld [vmem:[%s2022_s1 + $0xc8] ss:$16 sps:$4 sm:$0xff]   ;;  %v1430_v42 = vld [vmem:[%s2022_s1 + $0xa4] ss:$16 sps:$4 sm:$0xff]  }
   0xf   :  { %231 = vmatpush1.bf16.msra.mxu0 %v1389_v15  ;;  %v1433_v43 = vld [vmem:[%s2022_s1 + $0xac] ss:$16 sps:$4 sm:$0xff]   ;;  %v1428_v44 = vld [vmem:[%s2022_s1 + $0xa0] ss:$16 sps:$4 sm:$0xff]   ;;  %v1431_v45 = vld [vmem:[%s2022_s1 + $0xa8] ss:$16 sps:$4 sm:$0xff]  }
  0x10   :  { %274 = vmatpush1.bf16.msra.mxu1 %v1390_v16  ;;  %232 = vmatprep.subr.bf16.mxu0 %v1391_v17  ;;  %v1436_v46 = vld [vmem:[%s2022_s1 + $0x84] ss:$16 sps:$4 sm:$0xff]   ;;  %v1439_v47 = vld [vmem:[%s2022_s1 + $0x8c] ss:$16 sps:$4 sm:$0xff]   ;;  %v1434_v48 = vld [vmem:[%s2022_s1 + $0x80] ss:$16 sps:$4 sm:$0xff]  }
  0x11   :  { %275 = vmatprep.subr.bf16.mxu1 %v1393_v18  ;;  %v1437_v49 = vld [vmem:[%s2022_s1 + $0x88] ss:$16 sps:$4 sm:$0xff]   ;;  %v1442_v50 = vld [vmem:[%s2022_s1 + $0x64] ss:$16 sps:$4 sm:$0xff]   ;;  %v1445_v51 = vld [vmem:[%s2022_s1 + $0x6c] ss:$16 sps:$4 sm:$0xff]  }
  0x12   :  { %v1440_v52 = vld [vmem:[%s2022_s1 + $0x60] ss:$16 sps:$4 sm:$0xff]   ;;  %v1443_v53 = vld [vmem:[%s2022_s1 + $0x68] ss:$16 sps:$4 sm:$0xff]   ;;  %v1448_v54 = vld [vmem:[%s2022_s1 + $0x44] ss:$16 sps:$4 sm:$0xff]  }
  0x13   :  { %233 = vmatpush1.bf16.msra.mxu0 %v1395_v19  ;;  %v1451_v55 = vld [vmem:[%s2022_s1 + $0x4c] ss:$16 sps:$4 sm:$0xff]   ;;  %v1446_v56 = vld [vmem:[%s2022_s1 + $0x40] ss:$16 sps:$4 sm:$0xff]   ;;  %v1449_v57 = vld [vmem:[%s2022_s1 + $0x48] ss:$16 sps:$4 sm:$0xff]  }
  0x14   :  { %276 = vmatpush1.bf16.msra.mxu1 %v1396_v20  ;;  %234 = vmatprep.subr.bf16.mxu0 %v1397_v21  ;;  %v1454_v58 = vld [vmem:[%s2022_s1 + $0x24] ss:$16 sps:$4 sm:$0xff]   ;;  %v1457_v59 = vld [vmem:[%s2022_s1 + $0x2c] ss:$16 sps:$4 sm:$0xff]   ;;  %v1452_v60 = vld [vmem:[%s2022_s1 + $0x20] ss:$16 sps:$4 sm:$0xff]  }
  0x15   :  { %277 = vmatprep.subr.bf16.mxu1 %v1399_v22  ;;  %v1455_v61 = vld [vmem:[%s2022_s1 + $0x28] ss:$16 sps:$4 sm:$0xff]   ;;  %v1460_v62 = vld [vmem:[%s2022_s1 + $0x4] ss:$16 sps:$4 sm:$0xff]   ;;  %v1463_v63 = vld [vmem:[%s2022_s1 + $0xc] ss:$16 sps:$4 sm:$0xff]  }
  0x16   :  { %v1458_v0 = vld [vmem:[%s2022_s1] ss:$16 sps:$4 sm:$0xff]   ;;  %v1461_v2 = vld [vmem:[%s2022_s1 + $0x8] ss:$16 sps:$4 sm:$0xff]   ;;  %v1466_v3 = vld [vmem:[%s2023_s2 + $0xe4] ss:$16 sps:$4 sm:$0xff]  }
  0x17   :  { %235 = vmatpush1.bf16.msra.mxu0 %v1401_v23  ;;  %v1469_v4 = vld [vmem:[%s2023_s2 + $0xec] ss:$16 sps:$4 sm:$0xff]   ;;  %v1464_v5 = vld [vmem:[%s2023_s2 + $0xe0] ss:$16 sps:$4 sm:$0xff]   ;;  %v1467_v6 = vld [vmem:[%s2023_s2 + $0xe8] ss:$16 sps:$4 sm:$0xff]  }
  0x18   :  { %278 = vmatpush1.bf16.msra.mxu1 %v1402_v24  ;;  %236 = vmatprep.subr.bf16.mxu0 %v1403_v25  ;;  %v1472_v7 = vld [vmem:[%s2023_s2 + $0xc4] ss:$16 sps:$4 sm:$0xff]   ;;  %v1475_v8 = vld [vmem:[%s2023_s2 + $0xcc] ss:$16 sps:$4 sm:$0xff]   ;;  %v1470_v9 = vld [vmem:[%s2023_s2 + $0xc0] ss:$16 sps:$4 sm:$0xff]  }
  0x19   :  { %279 = vmatprep.subr.bf16.mxu1 %v1405_v26  ;;  %v1473_v10 = vld [vmem:[%s2023_s2 + $0xc8] ss:$16 sps:$4 sm:$0xff]   ;;  %v1478_v11 = vld [vmem:[%s2023_s2 + $0xa4] ss:$16 sps:$4 sm:$0xff]   ;;  %v1481_v12 = vld [vmem:[%s2023_s2 + $0xac] ss:$16 sps:$4 sm:$0xff]  }
  0x1a   :  { %v1476_v13 = vld [vmem:[%s2023_s2 + $0xa0] ss:$16 sps:$4 sm:$0xff]   ;;  %v1479_v14 = vld [vmem:[%s2023_s2 + $0xa8] ss:$16 sps:$4 sm:$0xff]   ;;  %v1484_v15 = vld [vmem:[%s2023_s2 + $0x84] ss:$16 sps:$4 sm:$0xff]  }
  0x1b   :  { %237 = vmatpush1.bf16.msra.mxu0 %v1407_v27  ;;  %v1487_v16 = vld [vmem:[%s2023_s2 + $0x8c] ss:$16 sps:$4 sm:$0xff]   ;;  %v1482_v17 = vld [vmem:[%s2023_s2 + $0x80] ss:$16 sps:$4 sm:$0xff]   ;;  %v1485_v18 = vld [vmem:[%s2023_s2 + $0x88] ss:$16 sps:$4 sm:$0xff]  }
  0x1c   :  { %280 = vmatpush1.bf16.msra.mxu1 %v1408_v28  ;;  %238 = vmatprep.subr.bf16.mxu0 %v1409_v29  ;;  %v1490_v19 = vld [vmem:[%s2023_s2 + $0x64] ss:$16 sps:$4 sm:$0xff]   ;;  %v1493_v20 = vld [vmem:[%s2023_s2 + $0x6c] ss:$16 sps:$4 sm:$0xff]   ;;  %v1488_v21 = vld [vmem:[%s2023_s2 + $0x60] ss:$16 sps:$4 sm:$0xff]  }
  0x1d   :  { %281 = vmatprep.subr.bf16.mxu1 %v1411_v30  ;;  %v1491_v22 = vld [vmem:[%s2023_s2 + $0x68] ss:$16 sps:$4 sm:$0xff]   ;;  %v1496_v23 = vld [vmem:[%s2023_s2 + $0x44] ss:$16 sps:$4 sm:$0xff]   ;;  %v1499_v24 = vld [vmem:[%s2023_s2 + $0x4c] ss:$16 sps:$4 sm:$0xff]  }
  0x1e   :  { %v1494_v25 = vld [vmem:[%s2023_s2 + $0x40] ss:$16 sps:$4 sm:$0xff]   ;;  %v1497_v26 = vld [vmem:[%s2023_s2 + $0x48] ss:$16 sps:$4 sm:$0xff]   ;;  %v1502_v27 = vld [vmem:[%s2023_s2 + $0x24] ss:$16 sps:$4 sm:$0xff]  }
  0x1f   :  { %239 = vmatpush1.bf16.msra.mxu0 %v1413_v31  ;;  %v1505_v28 = vld [vmem:[%s2023_s2 + $0x2c] ss:$16 sps:$4 sm:$0xff]   ;;  %v1168_v29 = vld [vmem:[%s2025_s5] sm:$0xff]  ;;  %v1503_v31 = vld [vmem:[%s2023_s2 + $0x28] ss:$16 sps:$4 sm:$0xff]  }
  0x20   :  { %282 = vmatpush1.bf16.msra.mxu1 %v1414_v32  ;;  %502 = vmatprep.subr.bf16.mxu0 %v1418_v33  ;;  %v1500_v30 = vld [vmem:[%s2023_s2 + $0x20] ss:$16 sps:$4 sm:$0xff]   ;;  %v1169_v32 = vld [vmem:[%s2025_s5 + $0x8] sm:$0xff]  ;;  %v1508_v33 = vld [vmem:[%s2023_s2 + $0x4] ss:$16 sps:$4 sm:$0xff]  }
  0x21   :  { %545 = vmatprep.subr.bf16.mxu1 %v1421_v34  ;;  %1172 = vperm.xlu0 %1366, %v1168_v29   ;;  %v1511_v34 = vld [vmem:[%s2023_s2 + $0xc] ss:$16 sps:$4 sm:$0xff]  }
  0x22   :  { %257 = vmatmul.mubr.bf16.vlgmr.msra.gmra.mxu0 %v1704_v35 }
  0x23   :  { %300 = vmatmul.mubr.bf16.vlgmr.msra.gmra.mxu1 %v1704_v35  ;;  %503 = vmatpush1.bf16.msra.mxu0 %v1416_v36  ;;  %v1506_v36 = vld [vmem:[%s2023_s2] ss:$16 sps:$4 sm:$0xff]  }
  0x24   :  { %546 = vmatpush1.bf16.msra.mxu1 %v1419_v37  ;;  %504 = vmatprep.subr.bf16.mxu0 %v1424_v38  ;;  %v1509_v37 = vld [vmem:[%s2023_s2 + $0x8] ss:$16 sps:$4 sm:$0xff]   ;;  %v1514_v38 = vld [vmem:[%s2024_s3 + $0xe4] ss:$16 sps:$4 sm:$0xff]  }
  0x25   :  { %547 = vmatprep.subr.bf16.mxu1 %v1427_v39  ;;  %534 = vmatprep.mubr.bf16.mxu0 %v1560_v1  ;;  %v1517_v39 = vld [vmem:[%s2024_s3 + $0xec] ss:$16 sps:$4 sm:$0xff]  }
  0x26   :  { %577 = vmatprep.mubr.bf16.mxu1 %v1560_v1  ;;  %1177 = vperm.xlu0 %1366, %v1169_v32  }
  0x27   :  { %505 = vmatpush1.bf16.msra.mxu0 %v1422_v40  ;;  %v1512_v40 = vld [vmem:[%s2024_s3 + $0xe0] ss:$16 sps:$4 sm:$0xff]  }
  0x28   :  { %548 = vmatpush1.bf16.msra.mxu1 %v1425_v41  ;;  %506 = vmatprep.subr.bf16.mxu0 %v1430_v42  ;;  %v1515_v41 = vld [vmem:[%s2024_s3 + $0xe8] ss:$16 sps:$4 sm:$0xff]   ;;  %v1520_v42 = vld [vmem:[%s2024_s3 + $0xc4] ss:$16 sps:$4 sm:$0xff]  }
  0x29   :  { %549 = vmatprep.subr.bf16.mxu1 %v1433_v43  ;;  %v1523_v43 = vld [vmem:[%s2024_s3 + $0xcc] ss:$16 sps:$4 sm:$0xff]  }
  0x2b   :  { %507 = vmatpush1.bf16.msra.mxu0 %v1428_v44  ;;  %v1518_v44 = vld [vmem:[%s2024_s3 + $0xc0] ss:$16 sps:$4 sm:$0xff]  }
  0x2c   :  { %550 = vmatpush1.bf16.msra.mxu1 %v1431_v45  ;;  %508 = vmatprep.subr.bf16.mxu0 %v1436_v46  ;;  %v1521_v45 = vld [vmem:[%s2024_s3 + $0xc8] ss:$16 sps:$4 sm:$0xff]   ;;  %v1526_v46 = vld [vmem:[%s2024_s3 + $0xa4] ss:$16 sps:$4 sm:$0xff]  }
  0x2d   :  { %551 = vmatprep.subr.bf16.mxu1 %v1439_v47  ;;  %v1529_v47 = vld [vmem:[%s2024_s3 + $0xac] ss:$16 sps:$4 sm:$0xff]  }
  0x2f   :  { %509 = vmatpush1.bf16.msra.mxu0 %v1434_v48  ;;  %v1524_v48 = vld [vmem:[%s2024_s3 + $0xa0] ss:$16 sps:$4 sm:$0xff]  }
  0x30   :  { %552 = vmatpush1.bf16.msra.mxu1 %v1437_v49  ;;  %510 = vmatprep.subr.bf16.mxu0 %v1442_v50  ;;  %v1527_v49 = vld [vmem:[%s2024_s3 + $0xa8] ss:$16 sps:$4 sm:$0xff]   ;;  %v1532_v50 = vld [vmem:[%s2024_s3 + $0x84] ss:$16 sps:$4 sm:$0xff]  }
  0x31   :  { %553 = vmatprep.subr.bf16.mxu1 %v1445_v51  ;;  %v1530_v51 = vld [vmem:[%s2024_s3 + $0x80] ss:$16 sps:$4 sm:$0xff]  }
  0x33   :  { %511 = vmatpush1.bf16.msra.mxu0 %v1440_v52  ;;  %v1533_v52 = vld [vmem:[%s2024_s3 + $0x88] ss:$16 sps:$4 sm:$0xff]  }
  0x34   :  { %554 = vmatpush1.bf16.msra.mxu1 %v1443_v53  ;;  %512 = vmatprep.subr.bf16.mxu0 %v1448_v54  ;;  %v1538_v53 = vld [vmem:[%s2024_s3 + $0x64] ss:$16 sps:$4 sm:$0xff]   ;;  %v1541_v54 = vld [vmem:[%s2024_s3 + $0x6c] ss:$16 sps:$4 sm:$0xff]  }
  0x35   :  { %555 = vmatprep.subr.bf16.mxu1 %v1451_v55  ;;  %v1536_v55 = vld [vmem:[%s2024_s3 + $0x60] ss:$16 sps:$4 sm:$0xff]  }
  0x37   :  { %513 = vmatpush1.bf16.msra.mxu0 %v1446_v56  ;;  %v1539_v56 = vld [vmem:[%s2024_s3 + $0x68] ss:$16 sps:$4 sm:$0xff]  }
  0x38   :  { %556 = vmatpush1.bf16.msra.mxu1 %v1449_v57  ;;  %514 = vmatprep.subr.bf16.mxu0 %v1454_v58  ;;  %v1544_v57 = vld [vmem:[%s2024_s3 + $0x44] ss:$16 sps:$4 sm:$0xff]   ;;  %v1547_v58 = vld [vmem:[%s2024_s3 + $0x4c] ss:$16 sps:$4 sm:$0xff]  }
  0x39   :  { %557 = vmatprep.subr.bf16.mxu1 %v1457_v59  ;;  %v1542_v59 = vld [vmem:[%s2024_s3 + $0x40] ss:$16 sps:$4 sm:$0xff]  }
  0x3b   :  { %515 = vmatpush1.bf16.msra.mxu0 %v1452_v60  ;;  %v1545_v60 = vld [vmem:[%s2024_s3 + $0x48] ss:$16 sps:$4 sm:$0xff]  }
  0x3c   :  { %558 = vmatpush1.bf16.msra.mxu1 %v1455_v61  ;;  %516 = vmatprep.subr.bf16.mxu0 %v1460_v62  ;;  %v1550_v61 = vld [vmem:[%s2024_s3 + $0x24] ss:$16 sps:$4 sm:$0xff]   ;;  %v1553_v62 = vld [vmem:[%s2024_s3 + $0x2c] ss:$16 sps:$4 sm:$0xff]  }
  0x3d   :  { %559 = vmatprep.subr.bf16.mxu1 %v1463_v63  ;;  %v1548_v63 = vld [vmem:[%s2024_s3 + $0x20] ss:$16 sps:$4 sm:$0xff]  }
  0x3f   :  { %517 = vmatpush1.bf16.msra.mxu0 %v1458_v0  ;;  %v1551_v0 = vld [vmem:[%s2024_s3 + $0x28] ss:$16 sps:$4 sm:$0xff]  }
  0x40   :  { %560 = vmatpush1.bf16.msra.mxu1 %v1461_v2  ;;  %780 = vmatprep.subr.bf16.mxu0 %v1466_v3  ;;  %v1556_v2 = vld [vmem:[%s2024_s3 + $0x4] ss:$16 sps:$4 sm:$0xff]   ;;  %v1559_v3 = vld [vmem:[%s2024_s3 + $0xc] ss:$16 sps:$4 sm:$0xff]  }
  0x41   :  { %823 = vmatprep.subr.bf16.mxu1 %v1469_v4  ;;  %v1554_v4 = vld [vmem:[%s2024_s3] ss:$16 sps:$4 sm:$0xff]  }
  0x42   :  { %535 = vmatmul.mubr.bf16.vlgmr.msra.gmra.mxu0 %v1704_v35 }
  0x43   :  { %578 = vmatmul.mubr.bf16.vlgmr.msra.gmra.mxu1 %v1704_v35  ;;  %781 = vmatpush1.bf16.msra.mxu0 %v1464_v5  ;;  %v1557_v5 = vld [vmem:[%s2024_s3 + $0x8] ss:$16 sps:$4 sm:$0xff]  }
  0x44   :  { %824 = vmatpush1.bf16.msra.mxu1 %v1467_v6  ;;  %782 = vmatprep.subr.bf16.mxu0 %v1472_v7 }
  0x45   :  { %825 = vmatprep.subr.bf16.mxu1 %v1475_v8  ;;  %812 = vmatprep.mubr.bf16.mxu0 %v1560_v1 }
  0x46   :  { %855 = vmatprep.mubr.bf16.mxu1 %v1560_v1 }
  0x47   :  { %783 = vmatpush1.bf16.msra.mxu0 %v1470_v9 }
  0x48   :  { %826 = vmatpush1.bf16.msra.mxu1 %v1473_v10  ;;  %784 = vmatprep.subr.bf16.mxu0 %v1478_v11 }
  0x49   :  { %827 = vmatprep.subr.bf16.mxu1 %v1481_v12 }
  0x4b   :  { %785 = vmatpush1.bf16.msra.mxu0 %v1476_v13 }
  0x4c   :  { %828 = vmatpush1.bf16.msra.mxu1 %v1479_v14  ;;  %786 = vmatprep.subr.bf16.mxu0 %v1484_v15 }
  0x4d   :  { %829 = vmatprep.subr.bf16.mxu1 %v1487_v16 }
  0x4f   :  { %787 = vmatpush1.bf16.msra.mxu0 %v1482_v17 }
  0x50   :  { %830 = vmatpush1.bf16.msra.mxu1 %v1485_v18  ;;  %788 = vmatprep.subr.bf16.mxu0 %v1490_v19 }
  0x51   :  { %831 = vmatprep.subr.bf16.mxu1 %v1493_v20 }
  0x53   :  { %789 = vmatpush1.bf16.msra.mxu0 %v1488_v21 }
  0x54   :  { %832 = vmatpush1.bf16.msra.mxu1 %v1491_v22  ;;  %790 = vmatprep.subr.bf16.mxu0 %v1496_v23 }
  0x55   :  { %833 = vmatprep.subr.bf16.mxu1 %v1499_v24 }
  0x57   :  { %791 = vmatpush1.bf16.msra.mxu0 %v1494_v25 }
  0x58   :  { %834 = vmatpush1.bf16.msra.mxu1 %v1497_v26  ;;  %792 = vmatprep.subr.bf16.mxu0 %v1502_v27 }
  0x59   :  { %835 = vmatprep.subr.bf16.mxu1 %v1505_v28 }
  0x5b   :  { %793 = vmatpush1.bf16.msra.mxu0 %v1500_v30 }
  0x5c   :  { %836 = vmatpush1.bf16.msra.mxu1 %v1503_v31  ;;  %794 = vmatprep.subr.bf16.mxu0 %v1508_v33 }
  0x5d   :  { %837 = vmatprep.subr.bf16.mxu1 %v1511_v34 }
  0x5f   :  { %795 = vmatpush1.bf16.msra.mxu0 %v1506_v36 }
  0x60   :  { %838 = vmatpush1.bf16.msra.mxu1 %v1509_v37  ;;  %1058 = vmatprep.subr.bf16.mxu0 %v1514_v38 }
  0x61   :  { %1101 = vmatprep.subr.bf16.mxu1 %v1517_v39 }
  0x62   :  { %813 = vmatmul.mubr.bf16.vlgmr.msra.gmra.mxu0 %v1704_v35 }
  0x63   :  { %856 = vmatmul.mubr.bf16.vlgmr.msra.gmra.mxu1 %v1704_v35  ;;  %1059 = vmatpush1.bf16.msra.mxu0 %v1512_v40 }
  0x64   :  { %1102 = vmatpush1.bf16.msra.mxu1 %v1515_v41  ;;  %1060 = vmatprep.subr.bf16.mxu0 %v1520_v42 }
  0x65   :  { %1103 = vmatprep.subr.bf16.mxu1 %v1523_v43  ;;  %1090 = vmatprep.mubr.bf16.mxu0 %v1560_v1 }
  0x66   :  { %1133 = vmatprep.mubr.bf16.mxu1 %v1560_v1  ;;  %v1535_v1 = vld [vmem:[%s2024_s3 + $0x8c] ss:$16 sps:$4 sm:$0xff]  }
  0x67   :  { %1061 = vmatpush1.bf16.msra.mxu0 %v1518_v44 }
  0x68   :  { %1104 = vmatpush1.bf16.msra.mxu1 %v1521_v45  ;;  %1062 = vmatprep.subr.bf16.mxu0 %v1526_v46 }
  0x69   :  { %1105 = vmatprep.subr.bf16.mxu1 %v1529_v47 }
  0x6b   :  { %1063 = vmatpush1.bf16.msra.mxu0 %v1524_v48 }
  0x6c   :  { %1106 = vmatpush1.bf16.msra.mxu1 %v1527_v49  ;;  %1064 = vmatprep.subr.bf16.mxu0 %v1532_v50 }
  0x6d   :  { %1107 = vmatprep.subr.bf16.mxu1 %v1535_v1 }
  0x6f   :  { %1065 = vmatpush1.bf16.msra.mxu0 %v1530_v51 }
  0x70   :  { %1108 = vmatpush1.bf16.msra.mxu1 %v1533_v52  ;;  %1066 = vmatprep.subr.bf16.mxu0 %v1538_v53 }
  0x71   :  { %1109 = vmatprep.subr.bf16.mxu1 %v1541_v54 }
  0x73   :  { %1067 = vmatpush1.bf16.msra.mxu0 %v1536_v55 }
  0x74   :  { %1110 = vmatpush1.bf16.msra.mxu1 %v1539_v56  ;;  %1068 = vmatprep.subr.bf16.mxu0 %v1544_v57 }
  0x75   :  { %1111 = vmatprep.subr.bf16.mxu1 %v1547_v58 }
  0x77   :  { %1069 = vmatpush1.bf16.msra.mxu0 %v1542_v59 }
  0x78   :  { %1112 = vmatpush1.bf16.msra.mxu1 %v1545_v60  ;;  %1070 = vmatprep.subr.bf16.mxu0 %v1550_v61 }
  0x79   :  { %1113 = vmatprep.subr.bf16.mxu1 %v1553_v62 }
  0x7b   :  { %1071 = vmatpush1.bf16.msra.mxu0 %v1548_v63 }
  0x7c   :  { %1114 = vmatpush1.bf16.msra.mxu1 %v1551_v0  ;;  %1072 = vmatprep.subr.bf16.mxu0 %v1556_v2 }
  0x7d   :  { %1115 = vmatprep.subr.bf16.mxu1 %v1559_v3 }
  0x7f   :  { %1073 = vmatpush1.bf16.msra.mxu0 %v1554_v4 }
  0x80   :  { %1116 = vmatpush1.bf16.msra.mxu1 %v1557_v5 }
  0x82   :  { %1091 = vmatmul.mubr.bf16.vlgmr.msra.gmra.mxu0 %v1704_v35 }
  0x83   :  { %1134 = vmatmul.mubr.bf16.vlgmr.msra.gmra.mxu1 %v1704_v35 }
  0x9c   :  { %v1173_v42 = vpop.permute.xlu0 %1172 }
  0xa1   :  { %v1178_v5 = vpop.permute.xlu0 %1177 }
  0xe2   :  { %v258_v6 = vpop.f32.mrf.mxu0 }
  0xe3   :  { %v301_v7 = vpop.f32.mrf.mxu1 }
  0xe4   :  { %v260_v8 = vpop.f32.mrf.mxu0 }
  0xe5   :  { %v303_v9 = vpop.f32.mrf.mxu1 }
  0xe6   :  { %v262_v10 = vpop.f32.mrf.mxu0 }
  0xe7   :  { %v305_v11 = vpop.f32.mrf.mxu1 }
  0xe8   :  { %v264_v12 = vpop.f32.mrf.mxu0 }
  0xe9   :  { %v307_v13 = vpop.f32.mrf.mxu1 }
 0x102   :  { %v536_v14 = vpop.f32.mrf.mxu0 }
 0x103   :  { %v579_v15 = vpop.f32.mrf.mxu1  ;;  %v1144_v31 = vmax.f32 %v258_v6, %v536_v14 }
 0x104   :  { %v538_v16 = vpop.f32.mrf.mxu0  ;;  %v1146_v32 = vmax.f32 %v301_v7, %v579_v15 }
 0x105   :  { %v581_v17 = vpop.f32.mrf.mxu1  ;;  %v1145_v36 = vmax.f32 %v260_v8, %v538_v16 }
 0x106   :  { %v540_v18 = vpop.f32.mrf.mxu0  ;;  %v1147_v37 = vmax.f32 %v303_v9, %v581_v17 }
 0x107   :  { %v583_v19 = vpop.f32.mrf.mxu1  ;;  %v1148_v1 = vmax.f32 %v262_v10, %v540_v18 }
 0x108   :  { %v542_v20 = vpop.f32.mrf.mxu0  ;;  %v1150_v51 = vmax.f32 %v305_v11, %v583_v19 }
 0x109   :  { %v585_v21 = vpop.f32.mrf.mxu1  ;;  %v1149_v56 = vmax.f32 %v264_v12, %v542_v20 }
 0x10a   :  { %v1151_v57 = vmax.f32 %v307_v13, %v585_v21 }
 0x122   :  { %v814_v22 = vpop.f32.mrf.mxu0 }
 0x123   :  { %v857_v23 = vpop.f32.mrf.mxu1 }
 0x124   :  { %v816_v24 = vpop.f32.mrf.mxu0 }
 0x125   :  { %v859_v35 = vpop.f32.mrf.mxu1 }
 0x126   :  { %v818_v25 = vpop.f32.mrf.mxu0 }
 0x127   :  { %v861_v26 = vpop.f32.mrf.mxu1 }
 0x128   :  { %v820_v27 = vpop.f32.mrf.mxu0 }
 0x129   :  { %v863_v28 = vpop.f32.mrf.mxu1 }
 0x142   :  { %v1092_v29 = vpop.f32.mrf.mxu0 }
 0x143   :  { %v1135_v30 = vpop.f32.mrf.mxu1  ;;  %v1152_v33 = vmax.f32 %v814_v22, %v1092_v29 }
 0x144   :  { %v1154_v34 = vmax.f32 %v857_v23, %v1135_v30  ;;  %v1094_v38 = vpop.f32.mrf.mxu0 }
 0x145   :  { %v1137_v39 = vpop.f32.mrf.mxu1  ;;  %v1160_v40 = vmax.f32 %v1144_v31, %v1152_v33  ;;  %v1153_v43 = vmax.f32 %v816_v24, %v1094_v38 }
 0x146   :  { %v1162_v41 = vmax.f32 %v1146_v32, %v1154_v34  ;;  %v1155_v44 = vmax.f32 %v859_v35, %v1137_v39  ;;  %v1096_v45 = vpop.f32.mrf.mxu0 }
 0x147   :  { %v1139_v46 = vpop.f32.mrf.mxu1  ;;  %v1180_v47 = vadd.f32 %v1173_v42, %v1160_v40  ;;  %v1161_v49 = vmax.f32 %v1145_v36, %v1153_v43  ;;  %v1156_v52 = vmax.f32 %v818_v25, %v1096_v45 }
 0x148   :  { %v1182_v48 = vadd.f32 %v1173_v42, %v1162_v41  ;;  %v1163_v50 = vmax.f32 %v1147_v37, %v1155_v44  ;;  %v1158_v53 = vmax.f32 %v861_v26, %v1139_v46  ;;  %v1098_v54 = vpop.f32.mrf.mxu0 }
 0x149   :  { %v1141_v55 = vpop.f32.mrf.mxu1  ;;  %v1181_v58 = vadd.f32 %v1173_v42, %v1161_v49  ;;  %v1164_v60 = vmax.f32 %v1148_v1, %v1156_v52  ;;  %v1157_v62 = vmax.f32 %v820_v27, %v1098_v54  ;;  %v1188_v0 = vmax.f32 %v1180_v47, 0.0 }
 0x14a   :  { %v1183_v59 = vadd.f32 %v1173_v42, %v1163_v50  ;;  %v1166_v61 = vmax.f32 %v1150_v51, %v1158_v53  ;;  %v1159_v63 = vmax.f32 %v863_v28, %v1141_v55  ;;  %v1190_v2 = vmax.f32 %v1182_v48, 0.0 }
 0x14b   :  { %v1189_v3 = vmax.f32 %v1181_v58, 0.0  ;;  %v1184_v6 = vadd.f32 %v1178_v5, %v1164_v60  ;;  %v1165_v8 = vmax.f32 %v1149_v56, %v1157_v62 }
 0x14c   :  { %v1191_v4 = vmax.f32 %v1183_v59, 0.0  ;;  %v1186_v7 = vadd.f32 %v1178_v5, %v1166_v61  ;;  %v1167_v9 = vmax.f32 %v1151_v57, %v1159_v63 }
 0x14d   :  { %v1361_v10 = vpack.c.bf16 %v1189_v3, %v1188_v0  ;;  %v1185_v14 = vadd.f32 %v1178_v5, %v1165_v8  ;;  %v1192_v13 = vmax.f32 %v1184_v6, 0.0 }
 0x14e   :  { %v1362_v11 = vpack.c.bf16 %v1191_v4, %v1190_v2  ;;  %v1187_v12 = vadd.f32 %v1178_v5, %v1167_v9  ;;  %v1194_v15 = vmax.f32 %v1186_v7, 0.0 }
 0x14f   :  { %1220 = vst [vmem:[%s2026_s6] sm:$0xff] %v1361_v10  ;;  %v1193_v16 = vmax.f32 %v1185_v14, 0.0 }
 0x150   :  { %1221 = vst [vmem:[%s2026_s6 + $0x8] sm:$0xff] %v1362_v11  ;;  %v1195_v17 = vmax.f32 %v1187_v12, 0.0 }
 0x151   :  { %v1363_v18 = vpack.c.bf16 %v1193_v16, %v1192_v13 }
 0x152   :  { %v1364_v19 = vpack.c.bf16 %v1195_v17, %v1194_v15 }
 0x153   :  { %1222 = vst [vmem:[%s2026_s6 + $0x10] sm:$0xff] %v1363_v18 }
 0x154   :  { %1223 = vst [vmem:[%s2026_s6 + $0x18] sm:$0xff] %v1364_v19 }

// kernel: lenet_forward.5
= control target key start
LH: loop header
LB: loop body
LE: loop exit
PB: predicated region body
PF: predicated region fallthrough
CT: control target
= control target key end

     0   :  { %v1245_v36 = vmov 0.0   ;;  %vm1246_vm0 = vmmov 0   ;;  %s1569_s1 = inlined_call_operand.vmem [shape: bf16[896,128], index: 1, kind: input, shape index: {}]   ;;  %s1570_s0 = inlined_call_operand.vmem [shape: bf16[16,896], index: 0, kind: input, shape index: {}]   ;;  %s1571_s3 = inlined_call_operand.vmem [shape: bf16[128,128], index: 3, kind: input, shape index: {}]   ;;  %s1572_s5 = inlined_call_operand.vmem [shape: bf16[128,128], index: 5, kind: input, shape index: {}]   ;;  %s1573_s2 = inlined_call_operand.vmem [shape: f32[1,128], index: 2, kind: input, shape index: {}]   ;;  %s1574_s4 = inlined_call_operand.vmem [shape: f32[1,128], index: 4, kind: input, shape index: {}]   ;;  %s1575_s6 = inlined_call_operand.vmem [shape: f32[1,128], index: 6, kind: input, shape index: {}]   ;;  %s1576_s7 = inlined_call_operand.vmem [shape: f32[16,128], index: 7, kind: output, shape index: {}]  }
   0x1   :  { %v1163_v0 = vld [vmem:[%s1569_s1 + $0x78] sm:$0xff]   ;;  %v1167_v4 = vld [vmem:[%s1569_s1 + $0x70] sm:$0xff]   ;;  %v1171_v8 = vld [vmem:[%s1569_s1 + $0x68] sm:$0xff]  }
   0x2   :  { %v1164_v1 = vld [vmem:[%s1569_s1 + $0xf8] sm:$0xff]   ;;  %1008 = vmatprep.subr.bf16.mxu0 %v1163_v0  ;;  %v1168_v5 = vld [vmem:[%s1569_s1 + $0xf0] sm:$0xff]   ;;  %v1172_v9 = vld [vmem:[%s1569_s1 + $0xe8] sm:$0xff]  }
   0x3   :  { %v1165_v2 = vld [vmem:[%s1569_s1 + $0x38] sm:$0xff]   ;;  %1030 = vmatprep.subr.bf16.mxu1 %v1164_v1  ;;  %v1169_v6 = vld [vmem:[%s1569_s1 + $0x30] sm:$0xff]   ;;  %v1173_v10 = vld [vmem:[%s1569_s1 + $0x28] sm:$0xff]  }
   0x4   :  { %v1166_v3 = vld [vmem:[%s1569_s1 + $0xb8] sm:$0xff]   ;;  %1009 = vmatpush3.bf16.msra.mxu0 %v1165_v2  ;;  %v1170_v7 = vld [vmem:[%s1569_s1 + $0xb0] sm:$0xff]   ;;  %v1174_v11 = vld [vmem:[%s1569_s1 + $0xa8] sm:$0xff]  }
   0x5   :  { %1031 = vmatpush3.bf16.msra.mxu1 %v1166_v3  ;;  %1010 = vmatprep.subr.bf16.mxu0 %v1167_v4  ;;  %v1175_v12 = vld [vmem:[%s1569_s1 + $0x60] sm:$0xff]   ;;  %v1179_v16 = vld [vmem:[%s1569_s1 + $0x58] sm:$0xff]   ;;  %v1183_v20 = vld [vmem:[%s1569_s1 + $0x50] sm:$0xff]  }
   0x6   :  { %1032 = vmatprep.subr.bf16.mxu1 %v1168_v5  ;;  %v1176_v13 = vld [vmem:[%s1569_s1 + $0xe0] sm:$0xff]   ;;  %v1180_v17 = vld [vmem:[%s1569_s1 + $0xd8] sm:$0xff]   ;;  %v1184_v21 = vld [vmem:[%s1569_s1 + $0xd0] sm:$0xff]  }
   0x7   :  { %v1177_v14 = vld [vmem:[%s1569_s1 + $0x20] sm:$0xff]   ;;  %v1181_v18 = vld [vmem:[%s1569_s1 + $0x18] sm:$0xff]   ;;  %v1185_v22 = vld [vmem:[%s1569_s1 + $0x10] sm:$0xff]  }
   0x8   :  { %1011 = vmatpush3.bf16.msra.mxu0 %v1169_v6  ;;  %v1178_v15 = vld [vmem:[%s1569_s1 + $0xa0] sm:$0xff]   ;;  %v1182_v19 = vld [vmem:[%s1569_s1 + $0x98] sm:$0xff]   ;;  %v1186_v23 = vld [vmem:[%s1569_s1 + $0x90] sm:$0xff]  }
   0x9   :  { %1033 = vmatpush3.bf16.msra.mxu1 %v1170_v7  ;;  %1012 = vmatprep.subr.bf16.mxu0 %v1171_v8  ;;  %v1187_v24 = vld [vmem:[%s1569_s1 + $0x48] sm:$0xff]   ;;  %v1191_v28 = vld [vmem:[%s1569_s1 + $0x40] sm:$0xff]   ;;  %v1201_v37 = vld [vmem:[%s1569_s1 + $0x178] sm:$0xff]  }
   0xa   :  { %1034 = vmatprep.subr.bf16.mxu1 %v1172_v9  ;;  %v1188_v25 = vld [vmem:[%s1569_s1 + $0xc8] sm:$0xff]   ;;  %v1192_v29 = vld [vmem:[%s1569_s1 + $0xc0] sm:$0xff]   ;;  %v1202_v38 = vld [vmem:[%s1569_s1 + $0x138] sm:$0xff]  }
   0xb   :  { %v1189_v26 = vld [vmem:[%s1569_s1 + $0x8] sm:$0xff]   ;;  %v1193_v30 = vld [vmem:[%s1569_s1] sm:$0xff]   ;;  %v1203_v39 = vld [vmem:[%s1569_s1 + $0x1b8] sm:$0xff]  }
   0xc   :  { %1013 = vmatpush3.bf16.msra.mxu0 %v1173_v10  ;;  %v1190_v27 = vld [vmem:[%s1569_s1 + $0x88] sm:$0xff]   ;;  %v1194_v31 = vld [vmem:[%s1569_s1 + $0x80] sm:$0xff]   ;;  %v1204_v40 = vld [vmem:[%s1569_s1 + $0x170] sm:$0xff]  }
   0xd   :  { %1035 = vmatpush3.bf16.msra.mxu1 %v1174_v11  ;;  %1014 = vmatprep.subr.bf16.mxu0 %v1175_v12  ;;  %v1195_v32 = vld [vmem:[%s1570_s0] ss:$28 sps:$4 sm:$0xff]   ;;  %v1198_v34 = vld [vmem:[%s1570_s0 + $0x8] ss:$28 sps:$4 sm:$0xff]   ;;  %v1205_v41 = vld [vmem:[%s1569_s1 + $0x130] sm:$0xff]  }
   0xe   :  { %1036 = vmatprep.subr.bf16.mxu1 %v1176_v13  ;;  %v1197_v33 = vld [vmem:[%s1570_s0 + $0x4] ss:$28 sps:$4 sm:$0xff]   ;;  %v1200_v35 = vld [vmem:[%s1570_s0 + $0xc] ss:$28 sps:$4 sm:$0xff]   ;;  %v1206_v42 = vld [vmem:[%s1569_s1 + $0x1b0] sm:$0xff]  }
   0xf   :  { %558 = vmatprep.mubr.bf16.mxu0 %v1197_v33  ;;  %599 = vmatprep.mubr.bf16.mxu1 %v1200_v35  ;;  %v1207_v43 = vld [vmem:[%s1569_s1 + $0x168] sm:$0xff]   ;;  %v1210_v46 = vld [vmem:[%s1569_s1 + $0x160] sm:$0xff]   ;;  %v1213_v49 = vld [vmem:[%s1569_s1 + $0x158] sm:$0xff]  }
  0x10   :  { %1015 = vmatpush3.bf16.msra.mxu0 %v1177_v14  ;;  %v1208_v44 = vld [vmem:[%s1569_s1 + $0x128] sm:$0xff]   ;;  %v1211_v47 = vld [vmem:[%s1569_s1 + $0x120] sm:$0xff]   ;;  %v1214_v50 = vld [vmem:[%s1569_s1 + $0x118] sm:$0xff]  }
  0x11   :  { %1037 = vmatpush3.bf16.msra.mxu1 %v1178_v15  ;;  %1016 = vmatprep.subr.bf16.mxu0 %v1179_v16  ;;  %v1209_v45 = vld [vmem:[%s1569_s1 + $0x1a8] sm:$0xff]   ;;  %v1212_v48 = vld [vmem:[%s1569_s1 + $0x1a0] sm:$0xff]   ;;  %v1215_v51 = vld [vmem:[%s1569_s1 + $0x198] sm:$0xff]  }
  0x12   :  { %1038 = vmatprep.subr.bf16.mxu1 %v1180_v17  ;;  %v1216_v52 = vld [vmem:[%s1569_s1 + $0x150] sm:$0xff]   ;;  %v1219_v55 = vld [vmem:[%s1569_s1 + $0x148] sm:$0xff]   ;;  %v1222_v58 = vld [vmem:[%s1569_s1 + $0x140] sm:$0xff]  }
  0x13   :  { %v1217_v53 = vld [vmem:[%s1569_s1 + $0x110] sm:$0xff]   ;;  %v1220_v56 = vld [vmem:[%s1569_s1 + $0x108] sm:$0xff]   ;;  %v1223_v60 = vld [vmem:[%s1569_s1 + $0x100] sm:$0xff]  }
  0x14   :  { %1017 = vmatpush3.bf16.msra.mxu0 %v1181_v18  ;;  %v1218_v54 = vld [vmem:[%s1569_s1 + $0x190] sm:$0xff]   ;;  %v1221_v57 = vld [vmem:[%s1569_s1 + $0x188] sm:$0xff]   ;;  %v1224_v61 = vld [vmem:[%s1569_s1 + $0x180] sm:$0xff]  }
  0x15   :  { %1039 = vmatpush3.bf16.msra.mxu1 %v1182_v19  ;;  %1018 = vmatprep.subr.bf16.mxu0 %v1183_v20  ;;  %v1227_v59 = vld [vmem:[%s1570_s0 + $0x14] ss:$28 sps:$4 sm:$0xff]   ;;  %v1229_v0 = vld [vmem:[%s1571_s3 + $0x38] sm:$0xff]   ;;  %v1231_v2 = vld [vmem:[%s1571_s3 + $0x28] sm:$0xff]  }
  0x16   :  { %1040 = vmatprep.subr.bf16.mxu1 %v1184_v21  ;;  %v1225_v62 = vld [vmem:[%s1570_s0 + $0x10] ss:$28 sps:$4 sm:$0xff]   ;;  %v1228_v63 = vld [vmem:[%s1570_s0 + $0x18] ss:$28 sps:$4 sm:$0xff]   ;;  %v1232_v3 = vld [vmem:[%s1571_s3 + $0x20] sm:$0xff]  }
  0x17   :  { %v1230_v1 = vld [vmem:[%s1571_s3 + $0x30] sm:$0xff]   ;;  %v1233_v4 = vld [vmem:[%s1571_s3 + $0x18] sm:$0xff]   ;;  %v1235_v6 = vld [vmem:[%s1571_s3 + $0x8] sm:$0xff]  }
  0x18   :  { %1019 = vmatpush3.bf16.msra.mxu0 %v1185_v22  ;;  %v1234_v5 = vld [vmem:[%s1571_s3 + $0x10] sm:$0xff]   ;;  %v1236_v7 = vld [vmem:[%s1571_s3] sm:$0xff]   ;;  %v1237_v8 = vld [vmem:[%s1572_s5 + $0x38] sm:$0xff]  }
  0x19   :  { %1041 = vmatpush3.bf16.msra.mxu1 %v1186_v23  ;;  %1020 = vmatprep.subr.bf16.mxu0 %v1187_v24  ;;  %v1238_v9 = vld [vmem:[%s1572_s5 + $0x30] sm:$0xff]   ;;  %v1239_v10 = vld [vmem:[%s1572_s5 + $0x28] sm:$0xff]   ;;  %v1240_v11 = vld [vmem:[%s1572_s5 + $0x20] sm:$0xff]  }
  0x1a   :  { %1042 = vmatprep.subr.bf16.mxu1 %v1188_v25  ;;  %v1241_v12 = vld [vmem:[%s1572_s5 + $0x18] sm:$0xff]   ;;  %v926_v20 = vld [vmem:[%s1573_s2] ss:$0 sm:$0xff] }
  0x1c   :  { %1021 = vmatpush3.bf16.msra.mxu0 %v1189_v26 }
  0x1d   :  { %1043 = vmatpush3.bf16.msra.mxu1 %v1190_v27  ;;  %1022 = vmatprep.subr.bf16.mxu0 %v1191_v28 }
  0x1e   :  { %1044 = vmatprep.subr.bf16.mxu1 %v1192_v29 }
  0x20   :  { %1023 = vmatpush3.bf16.msra.mxu0 %v1193_v30 }
  0x21   :  { %1045 = vmatpush3.bf16.msra.mxu1 %v1194_v31  ;;  %1052 = vmatprep.subr.bf16.mxu0 %v1201_v37 }
  0x22   :  { %1101 = vmatprep.subr.bf16.mxu1 %v1245_v36 }
  0x23   :  { %559 = vmatmul.mubr.bf16.vlgmr.msra.gmra.mxu0 %v1195_v32 }
  0x24   :  { %600 = vmatmul.mubr.bf16.vlgmr.msra.gmra.mxu1 %v1198_v34  ;;  %1053 = vmatpush3.bf16.msra.mxu0 %v1202_v38 }
  0x25   :  { %1117 = vmatprep.mubr.msk.bf16.mxu1 %vm1246_vm0, %v1245_v36  ;;  %1102 = vmatpush3.bf16.msra.mxu1 %v1203_v39 }
  0x26   :  { %1054 = vmatprep.subr.bf16.mxu0 %v1204_v40  ;;  %1103 = vmatprep.subr.bf16.mxu1 %v1245_v36 }
  0x27   :  { %640 = vmatprep.mubr.bf16.mxu0 %v1227_v59 }
  0x28   :  { %1055 = vmatpush3.bf16.msra.mxu0 %v1205_v41 }
  0x29   :  { %1104 = vmatpush3.bf16.msra.mxu1 %v1206_v42  ;;  %1056 = vmatprep.subr.bf16.mxu0 %v1207_v43 }
  0x2a   :  { %1105 = vmatprep.subr.bf16.mxu1 %v1245_v36 }
  0x2c   :  { %1057 = vmatpush3.bf16.msra.mxu0 %v1208_v44 }
  0x2d   :  { %1106 = vmatpush3.bf16.msra.mxu1 %v1209_v45  ;;  %1058 = vmatprep.subr.bf16.mxu0 %v1210_v46 }
  0x2e   :  { %1107 = vmatprep.subr.bf16.mxu1 %v1245_v36 }
  0x30   :  { %1059 = vmatpush3.bf16.msra.mxu0 %v1211_v47 }
  0x31   :  { %1108 = vmatpush3.bf16.msra.mxu1 %v1212_v48  ;;  %1060 = vmatprep.subr.bf16.mxu0 %v1213_v49  ;;  %v1242_v48 = vld [vmem:[%s1572_s5 + $0x10] sm:$0xff]   ;;  %v1243_v49 = vld [vmem:[%s1572_s5 + $0x8] sm:$0xff]  }
  0x32   :  { %1109 = vmatprep.subr.bf16.mxu1 %v1245_v36 }
  0x34   :  { %1061 = vmatpush3.bf16.msra.mxu0 %v1214_v50  ;;  %v1244_v50 = vld [vmem:[%s1572_s5] sm:$0xff]  }
  0x35   :  { %1110 = vmatpush3.bf16.msra.mxu1 %v1215_v51  ;;  %1062 = vmatprep.subr.bf16.mxu0 %v1216_v52  ;;  %v990_v51 = vld [vmem:[%s1574_s4] ss:$0 sm:$0xff] }
  0x36   :  { %1111 = vmatprep.subr.bf16.mxu1 %v1245_v36 }
  0x38   :  { %1063 = vmatpush3.bf16.msra.mxu0 %v1217_v53 }
  0x39   :  { %1112 = vmatpush3.bf16.msra.mxu1 %v1218_v54  ;;  %1064 = vmatprep.subr.bf16.mxu0 %v1219_v55 }
  0x3a   :  { %1113 = vmatprep.subr.bf16.mxu1 %v1245_v36 }
  0x3c   :  { %1065 = vmatpush3.bf16.msra.mxu0 %v1220_v56 }
  0x3d   :  { %1114 = vmatpush3.bf16.msra.mxu1 %v1221_v57  ;;  %1066 = vmatprep.subr.bf16.mxu0 %v1222_v58 }
  0x3e   :  { %1115 = vmatprep.subr.bf16.mxu1 %v1245_v36 }
  0x40   :  { %1067 = vmatpush3.bf16.msra.mxu0 %v1223_v60 }
  0x41   :  { %1116 = vmatpush3.bf16.msra.mxu1 %v1224_v61  ;;  %1121 = vmatprep.subr.bf16.mxu0 %v1245_v36 }
  0x42   :  { %1141 = vmatprep.subr.bf16.mxu1 %v1245_v36 }
  0x43   :  { %641 = vmatmul.mubr.bf16.vlgmr.msra.gmra.mxu0 %v1225_v62 }
  0x44   :  { %1118 = vmatmul.mubr.bf16.vlgmr.msra.gmra.mxu1 %v1228_v63  ;;  %1137 = vmatprep.mubr.msk.bf16.mxu0 %vm1246_vm0, %v1245_v36 }
  0x45   :  { %1157 = vmatprep.mubr.msk.bf16.mxu1 %vm1246_vm0, %v1245_v36  ;;  %1122 = vmatpush3.bf16.msra.mxu0 %v1229_v0 }
  0x46   :  { %1123 = vmatprep.subr.bf16.mxu0 %v1245_v36  ;;  %1142 = vmatpush3.bf16.msra.mxu1 %v1237_v8 }
  0x47   :  { %1143 = vmatprep.subr.bf16.mxu1 %v1245_v36 }
  0x49   :  { %1124 = vmatpush3.bf16.msra.mxu0 %v1230_v1 }
  0x4a   :  { %1125 = vmatprep.subr.bf16.mxu0 %v1245_v36  ;;  %1144 = vmatpush3.bf16.msra.mxu1 %v1238_v9 }
  0x4b   :  { %1145 = vmatprep.subr.bf16.mxu1 %v1245_v36 }
  0x4d   :  { %1126 = vmatpush3.bf16.msra.mxu0 %v1231_v2 }
  0x4e   :  { %1127 = vmatprep.subr.bf16.mxu0 %v1245_v36  ;;  %1146 = vmatpush3.bf16.msra.mxu1 %v1239_v10 }
  0x4f   :  { %1147 = vmatprep.subr.bf16.mxu1 %v1245_v36 }
  0x51   :  { %1128 = vmatpush3.bf16.msra.mxu0 %v1232_v3 }
  0x52   :  { %1129 = vmatprep.subr.bf16.mxu0 %v1245_v36  ;;  %1148 = vmatpush3.bf16.msra.mxu1 %v1240_v11 }
  0x53   :  { %1149 = vmatprep.subr.bf16.mxu1 %v1245_v36 }
  0x55   :  { %1130 = vmatpush3.bf16.msra.mxu0 %v1233_v4 }
  0x56   :  { %1131 = vmatprep.subr.bf16.mxu0 %v1245_v36  ;;  %1150 = vmatpush3.bf16.msra.mxu1 %v1241_v12 }
  0x57   :  { %1151 = vmatprep.subr.bf16.mxu1 %v1245_v36 }
  0x59   :  { %1132 = vmatpush3.bf16.msra.mxu0 %v1234_v5 }
  0x5a   :  { %1133 = vmatprep.subr.bf16.mxu0 %v1245_v36  ;;  %1152 = vmatpush3.bf16.msra.mxu1 %v1242_v48 }
  0x5b   :  { %1153 = vmatprep.subr.bf16.mxu1 %v1245_v36 }
  0x5d   :  { %1134 = vmatpush3.bf16.msra.mxu0 %v1235_v6 }
  0x5e   :  { %1135 = vmatprep.subr.bf16.mxu0 %v1245_v36  ;;  %1154 = vmatpush3.bf16.msra.mxu1 %v1243_v49 }
  0x5f   :  { %1155 = vmatprep.subr.bf16.mxu1 %v1245_v36  ;;  %v999_v36 = vld [vmem:[%s1575_s6] ss:$0 sm:$0xff] }
  0x61   :  { %1136 = vmatpush3.bf16.msra.mxu0 %v1236_v7 }
  0x62   :  { %1156 = vmatpush3.bf16.msra.mxu1 %v1244_v50 }
  0xe3   :  { %v1024_v13 = vpop.f32.mrf.mxu0 }
  0xe4   :  { %v1046_v14 = vpop.f32.mrf.mxu1 }
  0xe5   :  { %v1025_v15 = vpop.f32.mrf.mxu0 }
  0xe6   :  { %v1047_v16 = vpop.f32.mrf.mxu1  ;;  %v1026_v18 = vadd.f32 %v1025_v15, %v1024_v13 }
  0xe7   :  { %v1027_v17 = vpop.f32.mrf.mxu0  ;;  %v1048_v23 = vadd.f32 %v1047_v16, %v1046_v14 }
  0xe8   :  { %v1049_v19 = vpop.f32.mrf.mxu1  ;;  %v561_v22 = vadd.f32 %v1026_v18, %v926_v20 }
  0xe9   :  { %v1028_v21 = vpop.f32.mrf.mxu0 }
  0xea   :  { %v1029_v24 = vadd.f32 %v1028_v21, %v1027_v17  ;;  %v1050_v25 = vpop.f32.mrf.mxu1  ;;  %v602_v29 = vadd.f32 %v1048_v23, %v561_v22 }
  0xeb   :  { %v1051_v31 = vadd.f32 %v1050_v25, %v1049_v19 }
  0xec   :  { %v564_v30 = vadd.f32 %v1029_v24, %v926_v20 }
  0xee   :  { %v605_v39 = vadd.f32 %v1051_v31, %v564_v30 }
 0x103   :  { %v1068_v26 = vpop.f32.mrf.mxu0 }
 0x104   :  { %v683_v27 = vpop.f32.mrf.mxu1 }
 0x105   :  { %v1069_v28 = vpop.f32.mrf.mxu0 }
 0x106   :  { %v1070_v32 = vadd.f32 %v1069_v28, %v1068_v26  ;;  %v1119_v33 = vpop.f32.mrf.mxu1 }
 0x107   :  { %v1071_v34 = vpop.f32.mrf.mxu0 }
 0x108   :  { %v643_v35 = vadd.f32 %v1070_v32, %v602_v29  ;;  %v686_v37 = vpop.f32.mrf.mxu1 }
 0x109   :  { %v1072_v38 = vpop.f32.mrf.mxu0 }
 0x10a   :  { %v1073_v40 = vadd.f32 %v1072_v38, %v1071_v34  ;;  %v1120_v41 = vpop.f32.mrf.mxu1  ;;  %v684_v42 = vadd.f32 %v683_v27, %v643_v35 }
 0x10c   :  { %v646_v43 = vadd.f32 %v1073_v40, %v605_v39  ;;  %v690_v45 = vmax.f32 %v684_v42, 0.0 }
 0x10e   :  { %v687_v44 = vadd.f32 %v686_v37, %v646_v43 }
 0x110   :  { %v691_v46 = vmax.f32 %v687_v44, 0.0 }
 0x112   :  { %v692_v47 = vpack.c.bf16 %v691_v46, %v690_v45 }
 0x114   :  { %1138 = vmatmul.mubr.bf16.vlgmr.msra.gmra.mxu0 %v692_v47 }
 0x1d4   :  { %v798_v52 = vpop.f32.mrf.mxu0 }
 0x1d5   :  { %v799_v54 = vadd.f32 %v990_v51, %v798_v52 }
 0x1d6   :  { %v1139_v53 = vpop.f32.mrf.mxu0 }
 0x1d7   :  { %v805_v58 = vmax.f32 %v799_v54, 0.0 }
 0x1d8   :  { %v801_v55 = vpop.f32.mrf.mxu0 }
 0x1d9   :  { %v802_v56 = vadd.f32 %v990_v51, %v801_v55 }
 0x1da   :  { %v1140_v57 = vpop.f32.mrf.mxu0 }
 0x1db   :  { %v806_v59 = vmax.f32 %v802_v56, 0.0 }
 0x1dd   :  { %v807_v60 = vpack.c.bf16 %v806_v59, %v805_v58 }
 0x1df   :  { %1158 = vmatmul.mubr.bf16.vlgmr.msra.gmra.mxu1 %v807_v60 }
 0x29f   :  { %v913_v61 = vpop.f32.mrf.mxu1 }
 0x2a0   :  { %v914_v62 = vadd.f32 %v999_v36, %v913_v61 }
 0x2a1   :  { %v1159_v63 = vpop.f32.mrf.mxu1 }
 0x2a2   :  { %920 = vst [vmem:[%s1576_s7] sm:$0xff] %v914_v62 }
 0x2a3   :  { %v916_v0 = vpop.f32.mrf.mxu1 }
 0x2a4   :  { %v917_v1 = vadd.f32 %v999_v36, %v916_v0 }
 0x2a5   :  { %v1160_v2 = vpop.f32.mrf.mxu1 }
 0x2a6   :  { %921 = vst [vmem:[%s1576_s7 + $0x8] sm:$0xff] %v917_v1 }

// kernel: lenet_forward.4
= control target key start
LH: loop header
LB: loop body
LE: loop exit
PB: predicated region body
PF: predicated region fallthrough
CT: control target
= control target key end

     0   :  { %v2078_v20 = vmov 0   ;;  %s2612_s0 = inlined_call_operand.vmem [shape: bf16[512,128], index: 0, kind: input, shape index: {}]   ;;  %s2613_s4 = inlined_call_operand.vmem [shape: bf16[32,512], index: 4, kind: input, shape index: {}]   ;;  %s2614_s1 = inlined_call_operand.vmem [shape: bf16[512,128], index: 1, kind: input, shape index: {}]   ;;  %s2615_s2 = inlined_call_operand.vmem [shape: bf16[512,128], index: 2, kind: input, shape index: {}]   ;;  %s2616_s3 = inlined_call_operand.vmem [shape: bf16[512,128], index: 3, kind: input, shape index: {}]   ;;  %s2617_s5 = inlined_call_operand.vmem [shape: f32[32,1], index: 5, kind: input, shape index: {}]   ;;  %s2618_s6 = inlined_call_operand.vmem [shape: bf16[32,128], index: 6, kind: output, shape index: {}]  }
   0x1   :  { %v1938_v0 = vld [vmem:[%s2612_s0 + $0x78] sm:$0xff]   ;;  %v1942_v4 = vld [vmem:[%s2612_s0 + $0x70] sm:$0xff]   ;;  %v1946_v8 = vld [vmem:[%s2612_s0 + $0x68] sm:$0xff]   ;;  %1936 = vset.pattern.permute.xlu0 %v2078_v20  ;;  %1937 = vset.pattern.permute.xlu1 %v2078_v20 }
   0x2   :  { %v1939_v1 = vld [vmem:[%s2612_s0 + $0xf8] sm:$0xff]   ;;  %1711 = vmatprep.subr.bf16.mxu0 %v1938_v0  ;;  %v1943_v5 = vld [vmem:[%s2612_s0 + $0xf0] sm:$0xff]   ;;  %v1947_v9 = vld [vmem:[%s2612_s0 + $0xe8] sm:$0xff]  }
   0x3   :  { %v1940_v2 = vld [vmem:[%s2612_s0 + $0x38] sm:$0xff]   ;;  %1739 = vmatprep.subr.bf16.mxu1 %v1939_v1  ;;  %v1944_v6 = vld [vmem:[%s2612_s0 + $0x30] sm:$0xff]   ;;  %v1948_v10 = vld [vmem:[%s2612_s0 + $0x28] sm:$0xff]  }
   0x4   :  { %v1941_v3 = vld [vmem:[%s2612_s0 + $0xb8] sm:$0xff]   ;;  %1712 = vmatpush3.bf16.msra.mxu0 %v1940_v2  ;;  %v1945_v7 = vld [vmem:[%s2612_s0 + $0xb0] sm:$0xff]   ;;  %v1949_v11 = vld [vmem:[%s2612_s0 + $0xa8] sm:$0xff]  }
   0x5   :  { %1740 = vmatpush3.bf16.msra.mxu1 %v1941_v3  ;;  %1713 = vmatprep.subr.bf16.mxu0 %v1942_v4  ;;  %v1950_v12 = vld [vmem:[%s2612_s0 + $0x60] sm:$0xff]   ;;  %v1954_v16 = vld [vmem:[%s2612_s0 + $0x58] sm:$0xff]   ;;  %v1958_v21 = vld [vmem:[%s2612_s0 + $0x50] sm:$0xff]  }
   0x6   :  { %1741 = vmatprep.subr.bf16.mxu1 %v1943_v5  ;;  %v1951_v13 = vld [vmem:[%s2612_s0 + $0xe0] sm:$0xff]   ;;  %v1955_v17 = vld [vmem:[%s2612_s0 + $0xd8] sm:$0xff]   ;;  %v1959_v22 = vld [vmem:[%s2612_s0 + $0xd0] sm:$0xff]  }
   0x7   :  { %v1952_v14 = vld [vmem:[%s2612_s0 + $0x20] sm:$0xff]   ;;  %v1956_v18 = vld [vmem:[%s2612_s0 + $0x18] sm:$0xff]   ;;  %v1960_v23 = vld [vmem:[%s2612_s0 + $0x10] sm:$0xff]  }
   0x8   :  { %1714 = vmatpush3.bf16.msra.mxu0 %v1944_v6  ;;  %v1953_v15 = vld [vmem:[%s2612_s0 + $0xa0] sm:$0xff]   ;;  %v1957_v19 = vld [vmem:[%s2612_s0 + $0x98] sm:$0xff]   ;;  %v1961_v24 = vld [vmem:[%s2612_s0 + $0x90] sm:$0xff]  }
   0x9   :  { %1742 = vmatpush3.bf16.msra.mxu1 %v1945_v7  ;;  %1715 = vmatprep.subr.bf16.mxu0 %v1946_v8  ;;  %v1962_v25 = vld [vmem:[%s2612_s0 + $0x48] sm:$0xff]   ;;  %v1966_v29 = vld [vmem:[%s2612_s0 + $0x40] sm:$0xff]   ;;  %v1976_v37 = vld [vmem:[%s2614_s1 + $0x78] sm:$0xff]  }
   0xa   :  { %1743 = vmatprep.subr.bf16.mxu1 %v1947_v9  ;;  %v1963_v26 = vld [vmem:[%s2612_s0 + $0xc8] sm:$0xff]   ;;  %v1967_v30 = vld [vmem:[%s2612_s0 + $0xc0] sm:$0xff]   ;;  %v1977_v38 = vld [vmem:[%s2614_s1 + $0xf8] sm:$0xff]  }
   0xb   :  { %v1964_v27 = vld [vmem:[%s2612_s0 + $0x8] sm:$0xff]   ;;  %v1968_v31 = vld [vmem:[%s2612_s0] sm:$0xff]   ;;  %v1978_v39 = vld [vmem:[%s2614_s1 + $0x38] sm:$0xff]  }
   0xc   :  { %1716 = vmatpush3.bf16.msra.mxu0 %v1948_v10  ;;  %v1965_v28 = vld [vmem:[%s2612_s0 + $0x88] sm:$0xff]   ;;  %v1969_v32 = vld [vmem:[%s2612_s0 + $0x80] sm:$0xff]   ;;  %v1979_v40 = vld [vmem:[%s2614_s1 + $0xb8] sm:$0xff]  }
   0xd   :  { %1744 = vmatpush3.bf16.msra.mxu1 %v1949_v11  ;;  %1717 = vmatprep.subr.bf16.mxu0 %v1950_v12  ;;  %v2213_v33 = vld [vmem:[%s2613_s4 + $0x4] ss:$16 sps:$4 sm:$0xff]   ;;  %v2218_v34 = vld [vmem:[%s2613_s4 + $0xc] ss:$16 sps:$4 sm:$0xff]   ;;  %v2224_v35 = vld [vmem:[%s2613_s4] ss:$16 sps:$4 sm:$0xff]  }
   0xe   :  { %1745 = vmatprep.subr.bf16.mxu1 %v1951_v13  ;;  %360 = vmatprep.mubr.bf16.mxu0 %v2213_v33  ;;  %v2229_v36 = vld [vmem:[%s2613_s4 + $0x8] ss:$16 sps:$4 sm:$0xff]   ;;  %v1980_v41 = vld [vmem:[%s2614_s1 + $0x70] sm:$0xff]   ;;  %v1988_v49 = vld [vmem:[%s2614_s1 + $0x60] sm:$0xff]  }
   0xf   :  { %409 = vmatprep.mubr.bf16.mxu1 %v2218_v34  ;;  %v1981_v42 = vld [vmem:[%s2614_s1 + $0xf0] sm:$0xff]   ;;  %v1984_v45 = vld [vmem:[%s2614_s1 + $0x68] sm:$0xff]   ;;  %v1989_v50 = vld [vmem:[%s2614_s1 + $0xe0] sm:$0xff]  }
  0x10   :  { %1718 = vmatpush3.bf16.msra.mxu0 %v1952_v14  ;;  %v1982_v43 = vld [vmem:[%s2614_s1 + $0x30] sm:$0xff]   ;;  %v1985_v46 = vld [vmem:[%s2614_s1 + $0xe8] sm:$0xff]   ;;  %v1990_v51 = vld [vmem:[%s2614_s1 + $0x20] sm:$0xff]  }
  0x11   :  { %1746 = vmatpush3.bf16.msra.mxu1 %v1953_v15  ;;  %1719 = vmatprep.subr.bf16.mxu0 %v1954_v16  ;;  %v1983_v44 = vld [vmem:[%s2614_s1 + $0xb0] sm:$0xff]   ;;  %v1986_v47 = vld [vmem:[%s2614_s1 + $0x28] sm:$0xff]   ;;  %v1991_v52 = vld [vmem:[%s2614_s1 + $0xa0] sm:$0xff]  }
  0x12   :  { %1747 = vmatprep.subr.bf16.mxu1 %v1955_v17  ;;  %v1987_v48 = vld [vmem:[%s2614_s1 + $0xa8] sm:$0xff]   ;;  %v1992_v53 = vld [vmem:[%s2614_s1 + $0x58] sm:$0xff]   ;;  %v2297_v57 = vld [vmem:[%s2613_s4 + $0x24] ss:$16 sps:$4 sm:$0xff]  }
  0x13   :  { %v1993_v54 = vld [vmem:[%s2614_s1 + $0xd8] sm:$0xff]   ;;  %v2307_v59 = vld [vmem:[%s2613_s4 + $0x20] ss:$16 sps:$4 sm:$0xff]   ;;  %v2006_v1 = vld [vmem:[%s2614_s1 + $0x48] sm:$0xff]  }
  0x14   :  { %1720 = vmatpush3.bf16.msra.mxu0 %v1956_v18  ;;  %v1994_v55 = vld [vmem:[%s2614_s1 + $0x18] sm:$0xff]   ;;  %v2002_v61 = vld [vmem:[%s2614_s1 + $0x50] sm:$0xff]   ;;  %v2007_v2 = vld [vmem:[%s2614_s1 + $0xc8] sm:$0xff]  }
  0x15   :  { %1748 = vmatpush3.bf16.msra.mxu1 %v1957_v19  ;;  %1721 = vmatprep.subr.bf16.mxu0 %v1958_v21  ;;  %v1995_v56 = vld [vmem:[%s2614_s1 + $0x98] sm:$0xff]   ;;  %v2003_v62 = vld [vmem:[%s2614_s1 + $0xd0] sm:$0xff]   ;;  %v2008_v3 = vld [vmem:[%s2614_s1 + $0x8] sm:$0xff]  }
  0x16   :  { %1749 = vmatprep.subr.bf16.mxu1 %v1959_v22  ;;  %v2302_v58 = vld [vmem:[%s2613_s4 + $0x2c] ss:$16 sps:$4 sm:$0xff]   ;;  %v2313_v60 = vld [vmem:[%s2613_s4 + $0x28] ss:$16 sps:$4 sm:$0xff]   ;;  %v2004_v63 = vld [vmem:[%s2614_s1 + $0x10] sm:$0xff]  }
  0x17   :  { %v2005_v0 = vld [vmem:[%s2614_s1 + $0x90] sm:$0xff]   ;;  %v2009_v4 = vld [vmem:[%s2614_s1 + $0x88] sm:$0xff]   ;;  %v2010_v5 = vld [vmem:[%s2614_s1 + $0x40] sm:$0xff]  }
  0x18   :  { %1722 = vmatpush3.bf16.msra.mxu0 %v1960_v23  ;;  %v2011_v6 = vld [vmem:[%s2614_s1 + $0xc0] sm:$0xff]   ;;  %v2014_v9 = vld [vmem:[%s2615_s2 + $0x78] sm:$0xff]   ;;  %v2018_v13 = vld [vmem:[%s2615_s2 + $0x70] sm:$0xff]  }
  0x19   :  { %1750 = vmatpush3.bf16.msra.mxu1 %v1961_v24  ;;  %1723 = vmatprep.subr.bf16.mxu0 %v1962_v25  ;;  %v2012_v7 = vld [vmem:[%s2614_s1] sm:$0xff]   ;;  %v2015_v10 = vld [vmem:[%s2615_s2 + $0xf8] sm:$0xff]   ;;  %v2019_v14 = vld [vmem:[%s2615_s2 + $0xf0] sm:$0xff]  }
  0x1a   :  { %1751 = vmatprep.subr.bf16.mxu1 %v1963_v26  ;;  %v2013_v8 = vld [vmem:[%s2614_s1 + $0x80] sm:$0xff]   ;;  %v2016_v11 = vld [vmem:[%s2615_s2 + $0x38] sm:$0xff]   ;;  %v2020_v15 = vld [vmem:[%s2615_s2 + $0x30] sm:$0xff]  }
  0x1b   :  { %v2017_v12 = vld [vmem:[%s2615_s2 + $0xb8] sm:$0xff]   ;;  %v2021_v16 = vld [vmem:[%s2615_s2 + $0xb0] sm:$0xff]   ;;  %v2022_v17 = vld [vmem:[%s2615_s2 + $0x68] sm:$0xff]  }
  0x1c   :  { %1724 = vmatpush3.bf16.msra.mxu0 %v1964_v27  ;;  %v2023_v18 = vld [vmem:[%s2615_s2 + $0xe8] sm:$0xff]   ;;  %v2026_v21 = vld [vmem:[%s2615_s2 + $0x60] sm:$0xff]   ;;  %v2030_v25 = vld [vmem:[%s2615_s2 + $0x58] sm:$0xff]  }
  0x1d   :  { %1752 = vmatpush3.bf16.msra.mxu1 %v1965_v28  ;;  %1725 = vmatprep.subr.bf16.mxu0 %v1966_v29  ;;  %v2024_v19 = vld [vmem:[%s2615_s2 + $0x28] sm:$0xff]   ;;  %v2027_v22 = vld [vmem:[%s2615_s2 + $0xe0] sm:$0xff]   ;;  %v2031_v26 = vld [vmem:[%s2615_s2 + $0xd8] sm:$0xff]  }
  0x1e   :  { %1753 = vmatprep.subr.bf16.mxu1 %v1967_v30  ;;  %v2025_v20 = vld [vmem:[%s2615_s2 + $0xa8] sm:$0xff]   ;;  %v2028_v23 = vld [vmem:[%s2615_s2 + $0x20] sm:$0xff]   ;;  %v2032_v27 = vld [vmem:[%s2615_s2 + $0x18] sm:$0xff]  }
  0x1f   :  { %v2029_v24 = vld [vmem:[%s2615_s2 + $0xa0] sm:$0xff]   ;;  %v2033_v28 = vld [vmem:[%s2615_s2 + $0x98] sm:$0xff]   ;;  %v2034_v29 = vld [vmem:[%s2615_s2 + $0x50] sm:$0xff]  }
  0x20   :  { %1726 = vmatpush3.bf16.msra.mxu0 %v1968_v31  ;;  %v2035_v30 = vld [vmem:[%s2615_s2 + $0xd0] sm:$0xff]  }
  0x21   :  { %1754 = vmatpush3.bf16.msra.mxu1 %v1969_v32  ;;  %1767 = vmatprep.subr.bf16.mxu0 %v1976_v37  ;;  %v2036_v31 = vld [vmem:[%s2615_s2 + $0x10] sm:$0xff]   ;;  %v2038_v37 = vld [vmem:[%s2615_s2 + $0x48] sm:$0xff]  }
  0x22   :  { %1795 = vmatprep.subr.bf16.mxu1 %v1977_v38  ;;  %v2037_v32 = vld [vmem:[%s2615_s2 + $0x90] sm:$0xff]   ;;  %v2039_v38 = vld [vmem:[%s2615_s2 + $0xc8] sm:$0xff]  }
  0x23   :  { %361 = vmatmul.mubr.bf16.vlgmr.msra.gmra.mxu0 %v2224_v35 }
  0x24   :  { %410 = vmatmul.mubr.bf16.vlgmr.msra.gmra.mxu1 %v2229_v36  ;;  %1768 = vmatpush3.bf16.msra.mxu0 %v1978_v39  ;;  %v2040_v39 = vld [vmem:[%s2615_s2 + $0x8] sm:$0xff]  }
  0x25   :  { %1796 = vmatpush3.bf16.msra.mxu1 %v1979_v40  ;;  %1769 = vmatprep.subr.bf16.mxu0 %v1980_v41  ;;  %v2041_v40 = vld [vmem:[%s2615_s2 + $0x88] sm:$0xff]   ;;  %v2042_v41 = vld [vmem:[%s2615_s2 + $0x40] sm:$0xff]  }
  0x26   :  { %1797 = vmatprep.subr.bf16.mxu1 %v1981_v42  ;;  %368 = vmatprep.mubr.bf16.mxu0 %v2297_v57  ;;  %v2043_v42 = vld [vmem:[%s2615_s2 + $0xc0] sm:$0xff]  }
  0x27   :  { %417 = vmatprep.mubr.bf16.mxu1 %v2302_v58 }
  0x28   :  { %1770 = vmatpush3.bf16.msra.mxu0 %v1982_v43  ;;  %v2044_v43 = vld [vmem:[%s2615_s2] sm:$0xff]  }
  0x29   :  { %1798 = vmatpush3.bf16.msra.mxu1 %v1983_v44  ;;  %1771 = vmatprep.subr.bf16.mxu0 %v1984_v45  ;;  %v2045_v44 = vld [vmem:[%s2615_s2 + $0x80] sm:$0xff]   ;;  %v2046_v45 = vld [vmem:[%s2616_s3 + $0x78] sm:$0xff]  }
  0x2a   :  { %1799 = vmatprep.subr.bf16.mxu1 %v1985_v46  ;;  %v2047_v46 = vld [vmem:[%s2616_s3 + $0xf8] sm:$0xff]  }
  0x2b   :  { %369 = vmatmul.mubr.bf16.gmra.mxu0 %v2307_v59 }
  0x2c   :  { %1772 = vmatpush3.bf16.msra.mxu0 %v1986_v47  ;;  %418 = vmatmul.mubr.bf16.gmra.mxu1 %v2313_v60  ;;  %v2048_v47 = vld [vmem:[%s2616_s3 + $0x38] sm:$0xff]  }
  0x2d   :  { %1800 = vmatpush3.bf16.msra.mxu1 %v1987_v48  ;;  %1773 = vmatprep.subr.bf16.mxu0 %v1988_v49  ;;  %v2049_v48 = vld [vmem:[%s2616_s3 + $0xb8] sm:$0xff]   ;;  %v2050_v49 = vld [vmem:[%s2616_s3 + $0x70] sm:$0xff]  }
  0x2e   :  { %1801 = vmatprep.subr.bf16.mxu1 %v1989_v50  ;;  %714 = vmatprep.mubr.bf16.mxu0 %v2213_v33  ;;  %v2051_v50 = vld [vmem:[%s2616_s3 + $0xf0] sm:$0xff]  }
  0x2f   :  { %763 = vmatprep.mubr.bf16.mxu1 %v2218_v34 }
  0x30   :  { %1774 = vmatpush3.bf16.msra.mxu0 %v1990_v51  ;;  %v2052_v51 = vld [vmem:[%s2616_s3 + $0x30] sm:$0xff]  }
  0x31   :  { %1802 = vmatpush3.bf16.msra.mxu1 %v1991_v52  ;;  %1775 = vmatprep.subr.bf16.mxu0 %v1992_v53  ;;  %v2053_v52 = vld [vmem:[%s2616_s3 + $0xb0] sm:$0xff]   ;;  %v2054_v53 = vld [vmem:[%s2616_s3 + $0x68] sm:$0xff]  }
  0x32   :  { %1803 = vmatprep.subr.bf16.mxu1 %v1993_v54  ;;  %v2055_v54 = vld [vmem:[%s2616_s3 + $0xe8] sm:$0xff]  }
  0x34   :  { %1776 = vmatpush3.bf16.msra.mxu0 %v1994_v55  ;;  %v2056_v55 = vld [vmem:[%s2616_s3 + $0x28] sm:$0xff]  }
  0x35   :  { %1804 = vmatpush3.bf16.msra.mxu1 %v1995_v56  ;;  %1777 = vmatprep.subr.bf16.mxu0 %v2002_v61  ;;  %v2057_v56 = vld [vmem:[%s2616_s3 + $0xa8] sm:$0xff]   ;;  %v2058_v61 = vld [vmem:[%s2616_s3 + $0x60] sm:$0xff]  }
  0x36   :  { %1805 = vmatprep.subr.bf16.mxu1 %v2003_v62  ;;  %v2059_v62 = vld [vmem:[%s2616_s3 + $0xe0] sm:$0xff]  }
  0x38   :  { %1778 = vmatpush3.bf16.msra.mxu0 %v2004_v63  ;;  %v2060_v63 = vld [vmem:[%s2616_s3 + $0x20] sm:$0xff]  }
  0x39   :  { %1806 = vmatpush3.bf16.msra.mxu1 %v2005_v0  ;;  %1779 = vmatprep.subr.bf16.mxu0 %v2006_v1  ;;  %v2061_v0 = vld [vmem:[%s2616_s3 + $0xa0] sm:$0xff]   ;;  %v2062_v1 = vld [vmem:[%s2616_s3 + $0x58] sm:$0xff]  }
  0x3a   :  { %1807 = vmatprep.subr.bf16.mxu1 %v2007_v2  ;;  %v2065_v2 = vld [vmem:[%s2616_s3 + $0x98] sm:$0xff]  }
  0x3c   :  { %1780 = vmatpush3.bf16.msra.mxu0 %v2008_v3  ;;  %v2066_v3 = vld [vmem:[%s2616_s3 + $0x50] sm:$0xff]  }
  0x3d   :  { %1808 = vmatpush3.bf16.msra.mxu1 %v2009_v4  ;;  %1781 = vmatprep.subr.bf16.mxu0 %v2010_v5  ;;  %v2067_v4 = vld [vmem:[%s2616_s3 + $0xd0] sm:$0xff]  }
  0x3e   :  { %1809 = vmatprep.subr.bf16.mxu1 %v2011_v6  ;;  %v2068_v5 = vld [vmem:[%s2616_s3 + $0x10] sm:$0xff]  }
  0x3f   :  { %v2069_v6 = vld [vmem:[%s2616_s3 + $0x90] sm:$0xff]  }
  0x40   :  { %1782 = vmatpush3.bf16.msra.mxu0 %v2012_v7  ;;  %v2070_v7 = vld [vmem:[%s2616_s3 + $0x48] sm:$0xff]  }
  0x41   :  { %1810 = vmatpush3.bf16.msra.mxu1 %v2013_v8  ;;  %1823 = vmatprep.subr.bf16.mxu0 %v2014_v9  ;;  %v2071_v8 = vld [vmem:[%s2616_s3 + $0xc8] sm:$0xff]  }
  0x42   :  { %1851 = vmatprep.subr.bf16.mxu1 %v2015_v10  ;;  %v2072_v9 = vld [vmem:[%s2616_s3 + $0x8] sm:$0xff]  }
  0x43   :  { %715 = vmatmul.mubr.bf16.vlgmr.msra.gmra.mxu0 %v2224_v35  ;;  %v2073_v10 = vld [vmem:[%s2616_s3 + $0x88] sm:$0xff]  }
  0x44   :  { %764 = vmatmul.mubr.bf16.vlgmr.msra.gmra.mxu1 %v2229_v36  ;;  %1824 = vmatpush3.bf16.msra.mxu0 %v2016_v11  ;;  %v2074_v11 = vld [vmem:[%s2616_s3 + $0x40] sm:$0xff]  }
  0x45   :  { %1852 = vmatpush3.bf16.msra.mxu1 %v2017_v12  ;;  %722 = vmatprep.mubr.bf16.mxu0 %v2297_v57  ;;  %v2075_v12 = vld [vmem:[%s2616_s3 + $0xc0] sm:$0xff]  }
  0x46   :  { %1825 = vmatprep.subr.bf16.mxu0 %v2018_v13  ;;  %771 = vmatprep.mubr.bf16.mxu1 %v2302_v58  ;;  %v2076_v13 = vld [vmem:[%s2616_s3] sm:$0xff]  }
  0x47   :  { %1853 = vmatprep.subr.bf16.mxu1 %v2019_v14  ;;  %v2077_v14 = vld [vmem:[%s2616_s3 + $0x80] sm:$0xff]  }
  0x48   :  { %1826 = vmatpush3.bf16.msra.mxu0 %v2020_v15  ;;  %v1500_v15 = vld [vmem:[%s2617_s5] sm:$0xff] }
  0x49   :  { %1854 = vmatpush3.bf16.msra.mxu1 %v2021_v16  ;;  %1827 = vmatprep.subr.bf16.mxu0 %v2022_v17  ;;  %v1502_v16 = vld [vmem:[%s2617_s5 + $0x10] sm:$0xff]  ;;  %v1501_v17 = vld [vmem:[%s2617_s5 + $0x8] sm:$0xff] }
  0x4a   :  { %1855 = vmatprep.subr.bf16.mxu1 %v2023_v18  ;;  %1506 = vperm.xlu0 %1936, %v1500_v15   ;;  %v1503_v18 = vld [vmem:[%s2617_s5 + $0x18] sm:$0xff] }
  0x4b   :  { %723 = vmatmul.mubr.bf16.gmra.mxu0 %v2307_v59  ;;  %1516 = vperm.xlu1 %1937, %v1502_v16  }
  0x4c   :  { %772 = vmatmul.mubr.bf16.gmra.mxu1 %v2313_v60  ;;  %1828 = vmatpush3.bf16.msra.mxu0 %v2024_v19 }
  0x4d   :  { %1856 = vmatpush3.bf16.msra.mxu1 %v2025_v20  ;;  %1068 = vmatprep.mubr.bf16.mxu0 %v2213_v33 }
  0x4e   :  { %1829 = vmatprep.subr.bf16.mxu0 %v2026_v21  ;;  %1117 = vmatprep.mubr.bf16.mxu1 %v2218_v34 }
  0x4f   :  { %1857 = vmatprep.subr.bf16.mxu1 %v2027_v22  ;;  %1511 = vperm.xlu0 %1936, %v1501_v17  }
  0x50   :  { %1830 = vmatpush3.bf16.msra.mxu0 %v2028_v23  ;;  %1521 = vperm.xlu1 %1937, %v1503_v18  }
  0x51   :  { %1858 = vmatpush3.bf16.msra.mxu1 %v2029_v24  ;;  %1831 = vmatprep.subr.bf16.mxu0 %v2030_v25 }
  0x52   :  { %1859 = vmatprep.subr.bf16.mxu1 %v2031_v26 }
  0x54   :  { %1832 = vmatpush3.bf16.msra.mxu0 %v2032_v27 }
  0x55   :  { %1860 = vmatpush3.bf16.msra.mxu1 %v2033_v28  ;;  %1833 = vmatprep.subr.bf16.mxu0 %v2034_v29 }
  0x56   :  { %1861 = vmatprep.subr.bf16.mxu1 %v2035_v30 }
  0x58   :  { %1834 = vmatpush3.bf16.msra.mxu0 %v2036_v31 }
  0x59   :  { %1862 = vmatpush3.bf16.msra.mxu1 %v2037_v32  ;;  %1835 = vmatprep.subr.bf16.mxu0 %v2038_v37 }
  0x5a   :  { %1863 = vmatprep.subr.bf16.mxu1 %v2039_v38 }
  0x5c   :  { %1836 = vmatpush3.bf16.msra.mxu0 %v2040_v39 }
  0x5d   :  { %1864 = vmatpush3.bf16.msra.mxu1 %v2041_v40  ;;  %1837 = vmatprep.subr.bf16.mxu0 %v2042_v41 }
  0x5e   :  { %1865 = vmatprep.subr.bf16.mxu1 %v2043_v42 }
  0x60   :  { %1838 = vmatpush3.bf16.msra.mxu0 %v2044_v43 }
  0x61   :  { %1866 = vmatpush3.bf16.msra.mxu1 %v2045_v44  ;;  %1879 = vmatprep.subr.bf16.mxu0 %v2046_v45 }
  0x62   :  { %1907 = vmatprep.subr.bf16.mxu1 %v2047_v46 }
  0x63   :  { %1069 = vmatmul.mubr.bf16.vlgmr.msra.gmra.mxu0 %v2224_v35 }
  0x64   :  { %1118 = vmatmul.mubr.bf16.vlgmr.msra.gmra.mxu1 %v2229_v36  ;;  %1880 = vmatpush3.bf16.msra.mxu0 %v2048_v47 }
  0x65   :  { %1908 = vmatpush3.bf16.msra.mxu1 %v2049_v48  ;;  %1076 = vmatprep.mubr.bf16.mxu0 %v2297_v57 }
  0x66   :  { %1881 = vmatprep.subr.bf16.mxu0 %v2050_v49  ;;  %1125 = vmatprep.mubr.bf16.mxu1 %v2302_v58 }
  0x67   :  { %1909 = vmatprep.subr.bf16.mxu1 %v2051_v50 }
  0x68   :  { %1882 = vmatpush3.bf16.msra.mxu0 %v2052_v51 }
  0x69   :  { %1910 = vmatpush3.bf16.msra.mxu1 %v2053_v52  ;;  %1883 = vmatprep.subr.bf16.mxu0 %v2054_v53 }
  0x6a   :  { %1911 = vmatprep.subr.bf16.mxu1 %v2055_v54 }
  0x6b   :  { %1077 = vmatmul.mubr.bf16.gmra.mxu0 %v2307_v59 }
  0x6c   :  { %1884 = vmatpush3.bf16.msra.mxu0 %v2056_v55  ;;  %1126 = vmatmul.mubr.bf16.gmra.mxu1 %v2313_v60 }
  0x6d   :  { %1912 = vmatpush3.bf16.msra.mxu1 %v2057_v56  ;;  %1422 = vmatprep.mubr.bf16.mxu0 %v2213_v33  ;;  %v2063_v33 = vld [vmem:[%s2616_s3 + $0xd8] sm:$0xff]  }
  0x6e   :  { %1885 = vmatprep.subr.bf16.mxu0 %v2058_v61  ;;  %1471 = vmatprep.mubr.bf16.mxu1 %v2218_v34  ;;  %v2064_v34 = vld [vmem:[%s2616_s3 + $0x18] sm:$0xff]  }
  0x6f   :  { %1913 = vmatprep.subr.bf16.mxu1 %v2059_v62 }
  0x70   :  { %1886 = vmatpush3.bf16.msra.mxu0 %v2060_v63 }
  0x71   :  { %1914 = vmatpush3.bf16.msra.mxu1 %v2061_v0  ;;  %1887 = vmatprep.subr.bf16.mxu0 %v2062_v1 }
  0x72   :  { %1915 = vmatprep.subr.bf16.mxu1 %v2063_v33 }
  0x74   :  { %1888 = vmatpush3.bf16.msra.mxu0 %v2064_v34 }
  0x75   :  { %1916 = vmatpush3.bf16.msra.mxu1 %v2065_v2  ;;  %1889 = vmatprep.subr.bf16.mxu0 %v2066_v3 }
  0x76   :  { %1917 = vmatprep.subr.bf16.mxu1 %v2067_v4 }
  0x78   :  { %1890 = vmatpush3.bf16.msra.mxu0 %v2068_v5 }
  0x79   :  { %1918 = vmatpush3.bf16.msra.mxu1 %v2069_v6  ;;  %1891 = vmatprep.subr.bf16.mxu0 %v2070_v7 }
  0x7a   :  { %1919 = vmatprep.subr.bf16.mxu1 %v2071_v8 }
  0x7c   :  { %1892 = vmatpush3.bf16.msra.mxu0 %v2072_v9 }
  0x7d   :  { %1920 = vmatpush3.bf16.msra.mxu1 %v2073_v10  ;;  %1893 = vmatprep.subr.bf16.mxu0 %v2074_v11 }
  0x7e   :  { %1921 = vmatprep.subr.bf16.mxu1 %v2075_v12 }
  0x80   :  { %1894 = vmatpush3.bf16.msra.mxu0 %v2076_v13 }
  0x81   :  { %1922 = vmatpush3.bf16.msra.mxu1 %v2077_v14 }
  0x83   :  { %1423 = vmatmul.mubr.bf16.vlgmr.msra.gmra.mxu0 %v2224_v35 }
  0x84   :  { %1472 = vmatmul.mubr.bf16.vlgmr.msra.gmra.mxu1 %v2229_v36  ;;  %1430 = vmatprep.mubr.bf16.mxu0 %v2297_v57 }
  0x85   :  { %1479 = vmatprep.mubr.bf16.mxu1 %v2302_v58 }
  0x8b   :  { %1431 = vmatmul.mubr.bf16.gmra.mxu0 %v2307_v59 }
  0x8c   :  { %1480 = vmatmul.mubr.bf16.gmra.mxu1 %v2313_v60 }
  0xe3   :  { %v1727_v19 = vpop.f32.mrf.mxu0 }
  0xe4   :  { %v1755_v20 = vpop.f32.mrf.mxu1 }
  0xe5   :  { %v1728_v21 = vpop.f32.mrf.mxu0 }
  0xe6   :  { %v1756_v35 = vpop.f32.mrf.mxu1  ;;  %v1729_v3 = vadd.f32 %v1728_v21, %v1727_v19 }
  0xe7   :  { %v1730_v22 = vpop.f32.mrf.mxu0  ;;  %v1757_v4 = vadd.f32 %v1756_v35, %v1755_v20 }
  0xe8   :  { %v1758_v23 = vpop.f32.mrf.mxu1 }
  0xe9   :  { %v1731_v24 = vpop.f32.mrf.mxu0  ;;  %v412_v16 = vadd.f32 %v1757_v4, %v1729_v3 }
  0xea   :  { %v1759_v25 = vpop.f32.mrf.mxu1 }
  0xeb   :  { %v1733_v26 = vpop.f32.mrf.mxu0 }
  0xec   :  { %v1761_v36 = vpop.f32.mrf.mxu1 }
  0xed   :  { %v1734_v27 = vpop.f32.mrf.mxu0 }
  0xee   :  { %v1762_v57 = vpop.f32.mrf.mxu1  ;;  %v1735_v21 = vadd.f32 %v1734_v27, %v1733_v26 }
  0xef   :  { %v2582_v28 = vpop.f32.mrf.mxu0  ;;  %v1763_v35 = vadd.f32 %v1762_v57, %v1761_v36 }
  0xf0   :  { %2619 = vst [vmem:[#allocation2_spill] sm:$0xff] %v2582_v28  ;;  %v2584_v58 = vpop.f32.mrf.mxu1 }
  0xf1   :  { %2620 = vst [vmem:[#allocation3_spill] sm:$0xff] %v2584_v58  ;;  %v2586_v29 = vpop.f32.mrf.mxu0  ;;  %v1732_v58 = vadd.f32 %v1731_v24, %v1730_v22  ;;  %v420_v57 = vadd.f32 %v1763_v35, %v1735_v21 }
  0xf2   :  { %2621 = vst [vmem:[#allocation4_spill] sm:$0xff] %v2586_v29  ;;  %v2588_v59 = vpop.f32.mrf.mxu1  ;;  %v1760_v29 = vadd.f32 %v1759_v25, %v1758_v23 }
  0xf3   :  { %2622 = vst [vmem:[#allocation5_spill] sm:$0xff] %v2588_v59 }
  0xf4   :  { %v415_v22 = vadd.f32 %v1760_v29, %v1732_v58 }
  0xf7   :  { %v2623_v29 = vld [vmem:[#allocation2_spill] sm:$0xff] }
 0x103   :  { %v1783_v60 = vpop.f32.mrf.mxu0 }
 0x104   :  { %v1811_v30 = vpop.f32.mrf.mxu1 }
 0x105   :  { %v1784_v31 = vpop.f32.mrf.mxu0 }
 0x106   :  { %v1812_v32 = vpop.f32.mrf.mxu1  ;;  %v1785_v5 = vadd.f32 %v1784_v31, %v1783_v60 }
 0x107   :  { %v1786_v37 = vpop.f32.mrf.mxu0  ;;  %v1813_v6 = vadd.f32 %v1812_v32, %v1811_v30 }
 0x108   :  { %v1814_v38 = vpop.f32.mrf.mxu1 }
 0x109   :  { %v1787_v39 = vpop.f32.mrf.mxu0  ;;  %v766_v17 = vadd.f32 %v1813_v6, %v1785_v5 }
 0x10a   :  { %v1815_v40 = vpop.f32.mrf.mxu1  ;;  %v1788_v12 = vadd.f32 %v1787_v39, %v1786_v37 }
 0x10b   :  { %v1789_v41 = vpop.f32.mrf.mxu0  ;;  %v1816_v13 = vadd.f32 %v1815_v40, %v1814_v38  ;;  %v1507_v40 = vpop.permute.xlu0 %1506 }
 0x10c   :  { %v1817_v42 = vpop.f32.mrf.mxu1 }
 0x10d   :  { %v1790_v43 = vpop.f32.mrf.mxu0  ;;  %v769_v32 = vadd.f32 %v1816_v13, %v1788_v12 }
 0x10e   :  { %v1818_v44 = vpop.f32.mrf.mxu1 }
 0x10f   :  { %v2590_v45 = vpop.f32.mrf.mxu0  ;;  %v1819_v37 = vadd.f32 %v1818_v44, %v1817_v42  ;;  %v1489_v42 = vmax.f32 %v415_v22, %v769_v32 }
 0x110   :  { %v2592_v46 = vpop.f32.mrf.mxu1 }
 0x111   :  { %v2594_v47 = vpop.f32.mrf.mxu0 }
 0x112   :  { %v2596_v48 = vpop.f32.mrf.mxu1 }
 0x123   :  { %v1839_v49 = vpop.f32.mrf.mxu0 }
 0x124   :  { %v1867_v50 = vpop.f32.mrf.mxu1 }
 0x125   :  { %v1840_v51 = vpop.f32.mrf.mxu0 }
 0x126   :  { %v1868_v52 = vpop.f32.mrf.mxu1  ;;  %v1841_v9 = vadd.f32 %v1840_v51, %v1839_v49  ;;  %v1791_v49 = vadd.f32 %v1790_v43, %v1789_v41  ;;  %v1822_v43 = vadd.f32 %v2596_v48, %v2592_v46 }
 0x127   :  { %v1842_v53 = vpop.f32.mrf.mxu0  ;;  %v1869_v10 = vadd.f32 %v1868_v52, %v1867_v50  ;;  %v1488_v52 = vmax.f32 %v412_v16, %v766_v17 }
 0x128   :  { %v1870_v54 = vpop.f32.mrf.mxu1 }
 0x129   :  { %v1843_v55 = vpop.f32.mrf.mxu0  ;;  %v1120_v60 = vadd.f32 %v1869_v10, %v1841_v9 }
 0x12a   :  { %v1871_v56 = vpop.f32.mrf.mxu1  ;;  %v1844_v28 = vadd.f32 %v1843_v55, %v1842_v53 }
 0x12b   :  { %v1845_v61 = vpop.f32.mrf.mxu0  ;;  %v1872_v19 = vadd.f32 %v1871_v56, %v1870_v54  ;;  %v774_v54 = vadd.f32 %v1819_v37, %v1791_v49  ;;  %v2624_v56 = vld [vmem:[#allocation4_spill] sm:$0xff] }
 0x12c   :  { %v1873_v62 = vpop.f32.mrf.mxu1 }
 0x12d   :  { %v1846_v63 = vpop.f32.mrf.mxu0  ;;  %v1123_v23 = vadd.f32 %v1872_v19, %v1844_v28 }
 0x12e   :  { %v1874_v0 = vpop.f32.mrf.mxu1  ;;  %v1847_v25 = vadd.f32 %v1846_v63, %v1845_v61  ;;  %v1738_v61 = vadd.f32 %v2624_v56, %v2623_v29  ;;  %v2626_v63 = vld [vmem:[#allocation5_spill] sm:$0xff] }
 0x12f   :  { %v1848_v1 = vpop.f32.mrf.mxu0  ;;  %v1875_v53 = vadd.f32 %v1874_v0, %v1873_v62  ;;  %v2625_v62 = vld [vmem:[#allocation3_spill] sm:$0xff] }
 0x130   :  { %v1876_v33 = vpop.f32.mrf.mxu1  ;;  %v1766_v0 = vadd.f32 %v2626_v63, %v2625_v62 }
 0x131   :  { %v1849_v34 = vpop.f32.mrf.mxu0 }
 0x132   :  { %v1877_v2 = vpop.f32.mrf.mxu1  ;;  %v1850_v4 = vadd.f32 %v1849_v34, %v1848_v1  ;;  %v423_v16 = vadd.f32 %v1766_v0, %v1738_v61 }
 0x133   :  { %v1878_v5 = vadd.f32 %v1877_v2, %v1876_v33 }
 0x135   :  { %v1131_v17 = vadd.f32 %v1878_v5, %v1850_v4 }
 0x143   :  { %v1895_v7 = vpop.f32.mrf.mxu0 }
 0x144   :  { %v1923_v8 = vpop.f32.mrf.mxu1 }
 0x145   :  { %v1896_v11 = vpop.f32.mrf.mxu0 }
 0x146   :  { %v1897_v14 = vadd.f32 %v1896_v11, %v1895_v7  ;;  %v1924_v15 = vpop.f32.mrf.mxu1  ;;  %v1512_v7 = vpop.permute.xlu0 %1511  ;;  %v1490_v11 = vmax.f32 %v420_v57, %v774_v54 }
 0x147   :  { %v1925_v18 = vadd.f32 %v1924_v15, %v1923_v8  ;;  %v1898_v59 = vpop.f32.mrf.mxu0  ;;  %v1128_v8 = vadd.f32 %v1875_v53, %v1847_v25 }
 0x148   :  { %v1926_v20 = vpop.f32.mrf.mxu1 }
 0x149   :  { %v1474_v30 = vadd.f32 %v1925_v18, %v1897_v14  ;;  %v1899_v31 = vpop.f32.mrf.mxu0  ;;  %v1517_v18 = vpop.permute.xlu1 %1516 }
 0x14a   :  { %v1900_v38 = vadd.f32 %v1899_v31, %v1898_v59  ;;  %v1927_v39 = vpop.f32.mrf.mxu1  ;;  %v1794_v59 = vadd.f32 %v2594_v47, %v2590_v45 }
 0x14b   :  { %v1928_v50 = vadd.f32 %v1927_v39, %v1926_v20  ;;  %v1901_v51 = vpop.f32.mrf.mxu0  ;;  %v1492_v3 = vmax.f32 %v1120_v60, %v1474_v30 }
 0x14c   :  { %v1929_v24 = vpop.f32.mrf.mxu1  ;;  %v777_v12 = vadd.f32 %v1822_v43, %v1794_v59 }
 0x14d   :  { %v1477_v26 = vadd.f32 %v1928_v50, %v1900_v38  ;;  %v1496_v36 = vmax.f32 %v1488_v52, %v1492_v3  ;;  %v1902_v27 = vpop.f32.mrf.mxu0  ;;  %v1522_v30 = vpop.permute.xlu1 %1521 }
 0x14e   :  { %v1903_v55 = vadd.f32 %v1902_v27, %v1901_v51  ;;  %v1930_v41 = vpop.f32.mrf.mxu1  ;;  %v1491_v20 = vmax.f32 %v423_v16, %v777_v12 }
 0x14f   :  { %v1931_v44 = vadd.f32 %v1930_v41, %v1929_v24  ;;  %v1904_v58 = vpop.f32.mrf.mxu0  ;;  %v1493_v28 = vmax.f32 %v1123_v23, %v1477_v26  ;;  %v1524_v9 = vadd.f32 %v1507_v40, %v1496_v36 }
 0x150   :  { %v1932_v6 = vpop.f32.mrf.mxu1 }
 0x151   :  { %v1482_v10 = vadd.f32 %v1931_v44, %v1903_v55  ;;  %v1497_v45 = vmax.f32 %v1489_v42, %v1493_v28  ;;  %v1905_v47 = vpop.f32.mrf.mxu0  ;;  %v1528_v19 = vmax.f32 %v1524_v9, 0.0 }
 0x152   :  { %v1906_v46 = vadd.f32 %v1905_v47, %v1904_v58  ;;  %v1933_v48 = vpop.f32.mrf.mxu1 }
 0x153   :  { %v1494_v13 = vmax.f32 %v1128_v8, %v1482_v10  ;;  %v1525_v14 = vadd.f32 %v1512_v7, %v1497_v45  ;;  %v1934_v15 = vadd.f32 %v1933_v48, %v1932_v6 }
 0x155   :  { %v1498_v1 = vmax.f32 %v1490_v11, %v1494_v13  ;;  %v1529_v33 = vmax.f32 %v1525_v14, 0.0  ;;  %v1485_v34 = vadd.f32 %v1934_v15, %v1906_v46 }
 0x157   :  { %v1703_v2 = vpack.c.bf16 %v1529_v33, %v1528_v19  ;;  %v1495_v21 = vmax.f32 %v1131_v17, %v1485_v34  ;;  %v1526_v35 = vadd.f32 %v1517_v18, %v1498_v1 }
 0x159   :  { %1704 = vst [vmem:[%s2618_s6] sm:$0xff] %v1703_v2   ;;  %v1499_v60 = vmax.f32 %v1491_v20, %v1495_v21  ;;  %v1530_v32 = vmax.f32 %v1526_v35, 0.0 }
 0x15b   :  { %v1527_v31 = vadd.f32 %v1522_v30, %v1499_v60 }
 0x15d   :  { %v1531_v49 = vmax.f32 %v1527_v31, 0.0 }
 0x15f   :  { %v1708_v37 = vpack.c.bf16 %v1531_v49, %v1530_v32 }
 0x161   :  { %1710 = vst [vmem:[%s2618_s6 + $0x8] sm:$0xff] %v1708_v37  }

</bundles_post_ra>
